<compile_context>
chip_gen: v6e
topology: v6e:2x2x1
jax: 0.10.0
libtpu: 0.0.40
codegen_flags: <defaults>
</compile_context>

<pallas_src>
import functools

import jax
import jax.numpy as jnp
from jax import lax
from jax.experimental import pallas as pl
from jax.experimental.pallas import tpu as pltpu


IN_DIM = 4
HIDDEN = 64
OUT_DIM = 128

# Cap the point tile so double-buffered output blocks + f32 temporaries stay
# well inside v7x's 32 MiB scoped-VMEM default (64 MiB physical per TC).
_MAX_TM = 16384


def _round_up(x, m):
    return (x + m - 1) // m * m


def _make_kernel(compute_dtype):
    def kernel(x_ref, w1_ref, b1_ref, w2_ref, b2_ref, o_ref):
        # x_ref:  [IN_DIM, tm]     (NCL tile: channels on sublanes, points on lanes)
        # w1_ref: [IN_DIM, HIDDEN] (f32)     b1_ref: [1, HIDDEN]  (f32)
        # w2_ref: [HIDDEN, OUT_DIM] (compute_dtype)  b2_ref: [1, OUT_DIM] (f32)
        # o_ref:  [tm, OUT_DIM]
        x = x_ref[...].astype(jnp.float32)

        # Layer 1: contract the tiny channel axis (lhs dim 0 vs rhs dim 0) so h
        # lands directly in [tm, HIDDEN].  Kept in f32: the 4-deep contraction
        # is negligible work and this lowering already compiled clean (cheap
        # XLU transpose, no lane-padded [tm, 4] copy).
        h = lax.dot_general(
            x, w1_ref[...],
            dimension_numbers=(((0,), (0,)), ((), ())),
            preferred_element_type=jnp.float32,
        )
        h = jnp.maximum(h + b1_ref[...], 0.0)            # ReLU of layer 1 (f32)

        # Layer 2: standard [tm, 64] @ [64, 128] MXU matmul; operands in
        # compute_dtype (bf16 recommended), f32 accumulation.
        y = jnp.dot(h.astype(compute_dtype), w2_ref[...],
                    preferred_element_type=jnp.float32) + b2_ref[...]
        y = jnp.maximum(y, 0.0)                          # ReLU of layer 2 (f32)

        # Math stays f32; only the final store is downcast (bf16 store halves
        # the dominant HBM write on an output-bound kernel).
        o_ref[...] = y.astype(o_ref.dtype)

    return kernel


@functools.partial(jax.jit, static_argnames=("tm", "out_dtype", "compute_dtype"))
def contact_angle_feat(x, w1, b1, w2, b2, *, tm=8192, out_dtype=None,
                       compute_dtype=None):
    """x: [B, IN_DIM, M] (PyTorch NCL) or [B, M, IN_DIM]. Returns [B, M, OUT_DIM]."""
    if x.shape[1] != IN_DIM:                  # mirror the module's auto-permute
        x = jnp.transpose(x, (0, 2, 1))
    B, C, M = x.shape
    assert C == IN_DIM, "Input tensor must be in shape [B x 4 x M]"

    out_dtype = x.dtype if out_dtype is None else jnp.dtype(out_dtype)
    if compute_dtype is None:
        compute_dtype = jnp.bfloat16 if x.dtype == jnp.bfloat16 else jnp.float32
    compute_dtype = jnp.dtype(compute_dtype)

    tm = max(128, min(int(tm), _MAX_TM))

    # Small-M / large-B: per-step pipeline overhead (~0.35 us) would dominate a
    # (B, 1) grid of tiny tiles, so flatten points across the batch (the
    # per-point MLP is batch-independent).  Wrapper transpose is 16 B/point,
    # ~1/32 of the output traffic this kernel is bound by.
    flatten = (B > 1) and (M < tm)
    if flatten:
        x_k = jnp.transpose(x, (1, 0, 2)).reshape(1, IN_DIM, B * M)
        n_b, n_pts = 1, B * M
    else:
        x_k = x
        n_b, n_pts = B, M

    # Point tile: multiple of 128 (lanes), no larger than needed.  NO padding:
    # the grid uses cdiv and Pallas masks the partial last block (out-of-bounds
    # input lanes read garbage that is never stored; out-of-bounds output rows
    # are dropped), so no padded rows hit HBM and no trailing slice is needed.
    tm_eff = min(tm, _round_up(n_pts, 128))
    n_tiles = pl.cdiv(n_pts, tm_eff)

    w1r = w1.astype(jnp.float32)
    w2c = w2.astype(compute_dtype)
    b1r = b1.reshape(1, HIDDEN).astype(jnp.float32)
    b2r = b2.reshape(1, OUT_DIM).astype(jnp.float32)

    cost = pl.CostEstimate(
        flops=2 * B * M * (IN_DIM * HIDDEN + HIDDEN * OUT_DIM),
        transcendentals=0,
        bytes_accessed=(x.size * x.dtype.itemsize
                        + w1r.size * 4 + b1r.size * 4
                        + w2c.size * w2c.dtype.itemsize + b2r.size * 4
                        + B * M * OUT_DIM * jnp.dtype(out_dtype).itemsize),
    )

    out = pl.pallas_call(
        _make_kernel(compute_dtype),
        out_shape=jax.ShapeDtypeStruct((n_b, n_pts, OUT_DIM), out_dtype),
        grid_spec=pltpu.PrefetchScalarGridSpec(
            num_scalar_prefetch=0,
            grid=(n_b, n_tiles),
            in_specs=[
                # NCL input tile: (batch squeezed, 4 channels, tm points).
                pl.BlockSpec((None, IN_DIM, tm_eff), lambda b, i: (b, 0, i)),
                pl.BlockSpec((IN_DIM, HIDDEN), lambda b, i: (0, 0)),   # w1 (resident)
                pl.BlockSpec((1, HIDDEN), lambda b, i: (0, 0)),        # b1
                pl.BlockSpec((HIDDEN, OUT_DIM), lambda b, i: (0, 0)),  # w2 (resident)
                pl.BlockSpec((1, OUT_DIM), lambda b, i: (0, 0)),       # b2
            ],
            out_specs=pl.BlockSpec((None, tm_eff, OUT_DIM), lambda b, i: (b, i, 0)),
        ),
        compiler_params=pltpu.CompilerParams(
            # Independent axes -> lets v7x shard across its 2 TensorCores.
            dimension_semantics=("parallel", "parallel")),
        cost_estimate=cost,
    )(x_k, w1r, b1r, w2c, b2r)

    if flatten:
        out = out.reshape(B, M, OUT_DIM)
    return out


def _init_params(key):
    """Deterministic kaiming-normal-style init matching the layer shapes."""
    k1, k2, k3, k4 = jax.random.split(key, 4)
    # Conv1d(4, 64, k=1)  -> weight [64, 4]; stored transposed [4, 64]
    w1 = (jax.random.normal(k1, (IN_DIM, HIDDEN), jnp.float32)
          * jnp.sqrt(2.0 / IN_DIM))
    b1 = 0.01 * jax.random.normal(k2, (HIDDEN,), jnp.float32)
    # Conv1d(64, 128, k=1) -> weight [128, 64]; stored transposed [64, 128]
    w2 = (jax.random.normal(k3, (HIDDEN, OUT_DIM), jnp.float32)
          * jnp.sqrt(2.0 / HIDDEN))
    b2 = 0.01 * jax.random.normal(k4, (OUT_DIM,), jnp.float32)
    return w1, b1, w2, b2


def _reference(x, w1, b1, w2, b2):
    # pure-JAX reference of the module forward
    if x.shape[1] != IN_DIM:
        x = jnp.transpose(x, (0, 2, 1))
    xt = jnp.transpose(x, (0, 2, 1)).astype(jnp.float32)   # [B, M, 4]
    h = jnp.maximum(jnp.einsum("bmc,ch->bmh", xt, w1) + b1, 0.0)
    y = jnp.maximum(jnp.einsum("bmh,ho->bmo", h, w2) + b2, 0.0)
    return y                                                # [B, M, 128]


if __name__ == "__main__":
    key = jax.random.PRNGKey(0)
    kx, kp = jax.random.split(key)
    w1, b1, w2, b2 = _init_params(kp)

    # Case 1: small M (not a multiple of 128) with B>1 -> flattened point axis,
    # one masked partial tile, no padded rows written to HBM, no final slice.
    B, M = 2, 500
    x = jax.random.normal(kx, (B, IN_DIM, M), jnp.float32)
    out = jax.block_until_ready(contact_angle_feat(x, w1, b1, w2, b2))
    ref = _reference(x, w1, b1, w2, b2)
    assert out.shape == (B, M, OUT_DIM), out.shape
    assert jnp.allclose(out, ref, atol=1e-4, rtol=1e-4), "mismatch (flat path)"

    # Case 2: batched path with a masked partial final tile (tm=512, M=1000).
    B2, M2 = 2, 1000
    x2 = jax.random.normal(jax.random.PRNGKey(1), (B2, IN_DIM, M2), jnp.float32)
    out2 = jax.block_until_ready(contact_angle_feat(x2, w1, b1, w2, b2, tm=512))
    ref2 = _reference(x2, w1, b1, w2, b2)
    assert out2.shape == (B2, M2, OUT_DIM), out2.shape
    assert jnp.allclose(out2, ref2, atol=1e-4, rtol=1e-4), "mismatch (batched path)"

    # Case 3: recommended fast configuration for this output-HBM-bound kernel:
    # bf16 layer-2 MXU operands + bf16 store (halves the dominant HBM write).
    out_bf16 = jax.block_until_ready(
        contact_angle_feat(x, w1, b1, w2, b2,
                           out_dtype=jnp.bfloat16, compute_dtype=jnp.bfloat16))
    assert out_bf16.shape == (B, M, OUT_DIM), out_bf16.shape
    assert jnp.allclose(out_bf16.astype(jnp.float32), ref, atol=5e-2, rtol=5e-2), \
        "mismatch (bf16 path)"

    print("KERNEL_OK")
</pallas_src>

<mosaic_0001>
module attributes {stable_mosaic.version = 11 : i64} {
  func.func @kernel(%arg0: i32, %arg1: i32, %arg2: memref<1x4x1024xf32, #tpu.memory_space<vmem>>, %arg3: memref<4x64xf32, #tpu.memory_space<vmem>>, %arg4: memref<1x64xf32, #tpu.memory_space<vmem>>, %arg5: memref<64x128xf32, #tpu.memory_space<vmem>>, %arg6: memref<1x128xf32, #tpu.memory_space<vmem>>, %arg7: memref<1x1024x128xf32, #tpu.memory_space<vmem>>) attributes {dimension_semantics = [#tpu.dimension_semantics<parallel>, #tpu.dimension_semantics<parallel>], iteration_bounds = array<i64: 1, 1>, scalar_prefetch = 0 : i64, scratch_operands = 0 : i64, tpu.core_type = #tpu.core_type<tc>, window_params = [{transform_indices = @transform_0, window_bounds = array<i64: 1, 4, 1024>}, {pipeline_mode = #tpu.pipeline_mode<synchronous>, transform_indices = @transform_1, window_bounds = array<i64: 4, 64>}, {pipeline_mode = #tpu.pipeline_mode<synchronous>, transform_indices = @transform_2, window_bounds = array<i64: 1, 64>}, {pipeline_mode = #tpu.pipeline_mode<synchronous>, transform_indices = @transform_3, window_bounds = array<i64: 64, 128>}, {pipeline_mode = #tpu.pipeline_mode<synchronous>, transform_indices = @transform_4, window_bounds = array<i64: 1, 128>}, {transform_indices = @transform_5, window_bounds = array<i64: 1, 1024, 128>}]} {
    %c0 = arith.constant 0 : index
    %c0_0 = arith.constant 0 : index
    %c0_1 = arith.constant 0 : index
    %0 = vector.load %arg2[%c0, %c0_0, %c0_1] : memref<1x4x1024xf32, #tpu.memory_space<vmem>>, vector<1x4x1024xf32>
    %1 = vector.shape_cast %0 : vector<1x4x1024xf32> to vector<4x1024xf32>
    %c0_2 = arith.constant 0 : index
    %c0_3 = arith.constant 0 : index
    %2 = vector.load %arg3[%c0_2, %c0_3] : memref<4x64xf32, #tpu.memory_space<vmem>>, vector<4x64xf32>
    %cst = arith.constant dense<0.000000e+00> : vector<1024x64xf32>
    %3 = tpu.matmul %1, %2, %cst {dimension_numbers = #tpu.dot_dimension_numbers<[0], [0], [1], [1], [0, 1, 1, 1], [], []>} : vector<4x1024xf32>, vector<4x64xf32>, vector<1024x64xf32> -> vector<1024x64xf32>
    %c0_4 = arith.constant 0 : index
    %c0_5 = arith.constant 0 : index
    %4 = vector.load %arg4[%c0_4, %c0_5] : memref<1x64xf32, #tpu.memory_space<vmem>>, vector<1x64xf32>
    %5 = vector.broadcast %4 : vector<1x64xf32> to vector<1024x64xf32>
    %6 = arith.addf %3, %5 : vector<1024x64xf32>
    %cst_6 = arith.constant 0.000000e+00 : f32
    %7 = vector.broadcast %cst_6 : f32 to vector<1024x64xf32>
    %8 = arith.maximumf %6, %7 : vector<1024x64xf32>
    %c0_7 = arith.constant 0 : index
    %c0_8 = arith.constant 0 : index
    %9 = vector.load %arg5[%c0_7, %c0_8] : memref<64x128xf32, #tpu.memory_space<vmem>>, vector<64x128xf32>
    %cst_9 = arith.constant dense<0.000000e+00> : vector<1024x128xf32>
    %10 = tpu.matmul %8, %9, %cst_9 {dimension_numbers = #tpu.dot_dimension_numbers<[1], [0], [0], [1], [0, 0, 1, 1], [], []>} : vector<1024x64xf32>, vector<64x128xf32>, vector<1024x128xf32> -> vector<1024x128xf32>
    %c0_10 = arith.constant 0 : index
    %c0_11 = arith.constant 0 : index
    %11 = vector.load %arg6[%c0_10, %c0_11] : memref<1x128xf32, #tpu.memory_space<vmem>>, vector<1x128xf32>
    %12 = vector.broadcast %11 : vector<1x128xf32> to vector<1024x128xf32>
    %13 = arith.addf %10, %12 : vector<1024x128xf32>
    %cst_12 = arith.constant 0.000000e+00 : f32
    %14 = vector.broadcast %cst_12 : f32 to vector<1024x128xf32>
    %15 = arith.maximumf %13, %14 : vector<1024x128xf32>
    %c0_13 = arith.constant 0 : index
    %c0_14 = arith.constant 0 : index
    %c0_15 = arith.constant 0 : index
    %16 = vector.load %arg7[%c0_13, %c0_14, %c0_15] : memref<1x1024x128xf32, #tpu.memory_space<vmem>>, vector<1x1024x128xf32>
    %17 = vector.shape_cast %16 : vector<1x1024x128xf32> to vector<1024x128xf32>
    %18 = vector.shape_cast %15 : vector<1024x128xf32> to vector<1x1024x128xf32>
    tpu.vector_store %arg7[%c0_13, %c0_14, %c0_15], %18 {strides = array<i32>} : memref<1x1024x128xf32, #tpu.memory_space<vmem>>, vector<1x1024x128xf32>,
    return
  }
  func.func @transform_0(%arg0: i32, %arg1: i32) -> (i32, i32, i32) {
    %c0_i32 = arith.constant 0 : i32
    %c0_i32_0 = arith.constant 0 : i32
    return %arg0, %c0_i32, %arg1 : i32, i32, i32
  }
  func.func @transform_1(%arg0: i32, %arg1: i32) -> (i32, i32) {
    %c0_i32 = arith.constant 0 : i32
    %c0_i32_0 = arith.constant 0 : i32
    %c0_i32_1 = arith.constant 0 : i32
    return %c0_i32, %c0_i32_0 : i32, i32
  }
  func.func @transform_2(%arg0: i32, %arg1: i32) -> (i32, i32) {
    %c0_i32 = arith.constant 0 : i32
    %c0_i32_0 = arith.constant 0 : i32
    %c0_i32_1 = arith.constant 0 : i32
    return %c0_i32, %c0_i32_0 : i32, i32
  }
  func.func @transform_3(%arg0: i32, %arg1: i32) -> (i32, i32) {
    %c0_i32 = arith.constant 0 : i32
    %c0_i32_0 = arith.constant 0 : i32
    %c0_i32_1 = arith.constant 0 : i32
    return %c0_i32, %c0_i32_0 : i32, i32
  }
  func.func @transform_4(%arg0: i32, %arg1: i32) -> (i32, i32) {
    %c0_i32 = arith.constant 0 : i32
    %c0_i32_0 = arith.constant 0 : i32
    %c0_i32_1 = arith.constant 0 : i32
    return %c0_i32, %c0_i32_0 : i32, i32
  }
  func.func @transform_5(%arg0: i32, %arg1: i32) -> (i32, i32, i32) {
    %c0_i32 = arith.constant 0 : i32
    %c0_i32_0 = arith.constant 0 : i32
    return %arg0, %arg1, %c0_i32 : i32, i32, i32
  }
}

</mosaic_0001>

<bundles_post_ra>
// kernel: contact_angle_feat.1
= control target key start
LH: loop header
LB: loop body
LE: loop exit
PB: predicated region body
PF: predicated region fallthrough
CT: control target
= control target key end

     0   :  { %vm685_vm0 = vcmask 1043456   ;;  %vm300_vm1 = vcmask 31744   ;;  %vm1537_vm2 = vcmask 523264   ;;  %s5525_s0 = inlined_call_operand.vmem [shape: f32[1,4,1000], index: 0, kind: input, shape index: {}]   ;;  %s5526_s1 = inlined_call_operand.vmem [shape: f32[4,64], index: 1, kind: input, shape index: {}]   ;;  %s5527_s2 = inlined_call_operand.vmem [shape: f32[1,64], index: 2, kind: input, shape index: {}]   ;;  %s5528_s3 = inlined_call_operand.vmem [shape: f32[64,128], index: 3, kind: input, shape index: {}]   ;;  %s5529_s4 = inlined_call_operand.vmem [shape: f32[1,128], index: 4, kind: input, shape index: {}]   ;;  %s5530_s5 = inlined_call_operand.vmem [shape: f32[1,1000,128], index: 5, kind: output, shape index: {}]  }
   0x1   :  { %v20_v0 = vld [vmem:[%s5525_s0] sm:$0xff]  ;;  %v21_v1 = vld [vmem:[%s5525_s0 + $0x8] sm:$0xff]  ;;  %v22_v5 = vld [vmem:[%s5525_s0 + $0x10] sm:$0xff] }
   0x2   :  { %v24_v2 = vld [vmem:[%s5526_s1] sm:$0xf]  ;;  %44 = vxpose.xlu0.b32.start.end [1/1] (short) %v20_v0, 128  ;;  %108 = vxpose.xlu1.b32.start.end [1/1] (short) %v21_v1, 128  ;;  %v36_v3 = vcombine.high %v20_v0, %v20_v0  ;;  %v37_v4 = vcombine.high %v21_v1, %v21_v1  ;;  %v38_v6 = vcombine.high %v22_v5, %v22_v5  ;;  %v23_v35 = vld [vmem:[%s5525_s0 + $0x18] sm:$0xff]  ;;  %v1528_v46 = vld [vmem:[%s5528_s3 + $0x30] sm:$0xff] }
   0x3   :  { %3944 = vmatprep.subr.msk.mxu0 %vm685_vm0, %v24_v2  ;;  %v39_v36 = vcombine.high %v23_v35, %v23_v35  ;;  %v1529_v45 = vld [vmem:[%s5528_s3 + $0x38] sm:$0xff]  ;;  %v1527_v49 = vld [vmem:[%s5528_s3 + $0x28] sm:$0xff]  ;;  %v1526_v50 = vld [vmem:[%s5528_s3 + $0x20] sm:$0xff] }
   0x4   :  { %3945 = vmatpush3.msk.msra.mxu0 %vm685_vm0, %v24_v2  ;;  %4346 = vmatprep.subr.mxu1 %v1529_v45  ;;  %v1525_v53 = vld [vmem:[%s5528_s3 + $0x18] sm:$0xff]  ;;  %v1524_v54 = vld [vmem:[%s5528_s3 + $0x10] sm:$0xff]  ;;  %v1523_v57 = vld [vmem:[%s5528_s3 + $0x8] sm:$0xff] }
   0x5   :  { %4354 = vmatpush3.msra.mxu1 %v1529_v45  ;;  %4138 = vmatprep.subr.mxu0 %v1529_v45  ;;  %v1522_v58 = vld [vmem:[%s5528_s3] sm:$0xff] }
   0x6   :  { %4347 = vmatprep.subr.mxu1 %v1528_v46 }
   0x7   :  { %4355 = vmatpush3.msra.mxu1 %v1528_v46 }
   0x8   :  { %4348 = vmatprep.subr.mxu1 %v1527_v49 }
   0x9   :  { %4356 = vmatpush3.msra.mxu1 %v1527_v49 }
   0xa   :  { %4349 = vmatprep.subr.mxu1 %v1526_v50 }
   0xb   :  { %4357 = vmatpush3.msra.mxu1 %v1526_v50 }
   0xc   :  { %4350 = vmatprep.subr.mxu1 %v1525_v53 }
   0xd   :  { %4358 = vmatpush3.msra.mxu1 %v1525_v53 }
   0xe   :  { %4351 = vmatprep.subr.mxu1 %v1524_v54 }
   0xf   :  { %4359 = vmatpush3.msra.mxu1 %v1524_v54 }
  0x10   :  { %4352 = vmatprep.subr.mxu1 %v1523_v57 }
  0x11   :  { %4360 = vmatpush3.msra.mxu1 %v1523_v57 }
  0x12   :  { %4353 = vmatprep.subr.mxu1 %v1522_v58 }
  0x13   :  { %4361 = vmatpush3.msra.mxu1 %v1522_v58 }
  0x3f   :  { %76 = vxpose.xlu0.b32.start.end [1/1] (short) %v36_v3, 128  ;;  %140 = vxpose.xlu1.b32.start.end [1/1] (short) %v37_v4, 128 }
  0x7c   :  { %172 = vxpose.xlu0.b32.start.end [1/1] (short) %v22_v5, 128  ;;  %204 = vxpose.xlu1.b32.start.end [1/1] (short) %v38_v6, 128 }
  0x7e   :  { %v60_v7 = vpop.trf.xlu0  ;;  %v4411_v8 = vpop.trf.xlu1 }
  0x7f   :  { %3946 = vmatprep.mubr.msk.f32.mxu0 %vm300_vm1, %v60_v7 }
  0x82   :  { %v61_v9 = vpop.trf.xlu0  ;;  %v4414_v10 = vpop.trf.xlu1 }
  0x83   :  { %3947 = vmatmul.mubr.msk.f32.vlgmr.msra.gmra.mxu0 %vm300_vm1, %v61_v9 }
  0x84   :  { %4139 = vmatpush3.msra.mxu0 %v1529_v45 }
  0x85   :  { %4140 = vmatprep.subr.mxu0 %v1528_v46 }
  0x86   :  { %v62_v11 = vpop.trf.xlu0  ;;  %v4417_v12 = vpop.trf.xlu1  ;;  %4141 = vmatpush3.msra.mxu0 %v1528_v46 }
  0x87   :  { %3949 = vmatprep.mubr.msk.f32.mxu0 %vm300_vm1, %v62_v11  ;;  %4142 = vmatprep.subr.mxu0 %v1527_v49 }
  0x88   :  { %4143 = vmatpush3.msra.mxu0 %v1527_v49 }
  0x89   :  { %4144 = vmatprep.subr.mxu0 %v1526_v50 }
  0x8a   :  { %v63_v13 = vpop.trf.xlu0  ;;  %v4420_v14 = vpop.trf.xlu1  ;;  %4145 = vmatpush3.msra.mxu0 %v1526_v50 }
  0x8b   :  { %3950 = vmatmul.mubr.msk.f32.gmra.mxu0 %vm300_vm1, %v63_v13  ;;  %4146 = vmatprep.subr.mxu0 %v1525_v53 }
  0x8c   :  { %4147 = vmatpush3.msra.mxu0 %v1525_v53 }
  0x8d   :  { %4148 = vmatprep.subr.mxu0 %v1524_v54 }
  0x8e   :  { %v64_v15 = vpop.trf.xlu0  ;;  %v4423_v16 = vpop.trf.xlu1  ;;  %4149 = vmatpush3.msra.mxu0 %v1524_v54 }
  0x8f   :  { %3952 = vmatprep.mubr.msk.f32.mxu0 %vm300_vm1, %v64_v15  ;;  %4150 = vmatprep.subr.mxu0 %v1523_v57 }
  0x90   :  { %4151 = vmatpush3.msra.mxu0 %v1523_v57 }
  0x91   :  { %4152 = vmatprep.subr.mxu0 %v1522_v58 }
  0x92   :  { %v65_v17 = vpop.trf.xlu0  ;;  %v4426_v18 = vpop.trf.xlu1  ;;  %4153 = vmatpush3.msra.mxu0 %v1522_v58 }
  0x93   :  { %3953 = vmatmul.mubr.msk.f32.gmra.mxu0 %vm300_vm1, %v65_v17 }
  0x96   :  { %v66_v19 = vpop.trf.xlu0  ;;  %v4429_v20 = vpop.trf.xlu1 }
  0x97   :  { %3955 = vmatprep.mubr.msk.f32.mxu0 %vm300_vm1, %v66_v19 }
  0x9a   :  { %v67_v21 = vpop.trf.xlu0  ;;  %v4432_v22 = vpop.trf.xlu1 }
  0x9b   :  { %3956 = vmatmul.mubr.msk.f32.gmra.mxu0 %vm300_vm1, %v67_v21 }
  0x9e   :  { %v68_v23 = vpop.trf.xlu0  ;;  %v4435_v24 = vpop.trf.xlu1 }
  0x9f   :  { %3958 = vmatprep.mubr.msk.f32.mxu0 %vm300_vm1, %v68_v23 }
  0xa2   :  { %v69_v25 = vpop.trf.xlu0  ;;  %v4438_v26 = vpop.trf.xlu1 }
  0xa3   :  { %3959 = vmatmul.mubr.msk.f32.gmra.mxu0 %vm300_vm1, %v69_v25 }
  0xa6   :  { %v70_v27 = vpop.trf.xlu0  ;;  %v4441_v28 = vpop.trf.xlu1 }
  0xa7   :  { %3961 = vmatprep.mubr.msk.f32.mxu0 %vm300_vm1, %v70_v27 }
  0xaa   :  { %v71_v29 = vpop.trf.xlu0  ;;  %v4444_v30 = vpop.trf.xlu1 }
  0xab   :  { %3962 = vmatmul.mubr.msk.f32.gmra.mxu0 %vm300_vm1, %v71_v29 }
  0xae   :  { %v72_v31 = vpop.trf.xlu0  ;;  %v4447_v32 = vpop.trf.xlu1 }
  0xaf   :  { %3964 = vmatprep.mubr.msk.f32.mxu0 %vm300_vm1, %v72_v31 }
  0xb2   :  { %v73_v33 = vpop.trf.xlu0  ;;  %v4450_v34 = vpop.trf.xlu1 }
  0xb3   :  { %3965 = vmatmul.mubr.msk.f32.gmra.mxu0 %vm300_vm1, %v73_v33 }
  0xb6   :  { %v74_v37 = vpop.trf.xlu0  ;;  %v4456_v38 = vpop.trf.xlu1 }
  0xb7   :  { %3967 = vmatprep.mubr.msk.f32.mxu0 %vm300_vm1, %v74_v37 }
  0xb9   :  { %236 = vxpose.xlu0.b32.start.end [1/1] (short) %v23_v35, 128  ;;  %268 = vxpose.xlu1.b32.start.end [1/1] (short) %v39_v36, 128 }
  0xba   :  { %v75_v39 = vpop.trf.xlu0  ;;  %v4459_v40 = vpop.trf.xlu1 }
  0xbb   :  { %3968 = vmatmul.mubr.msk.f32.gmra.mxu0 %vm300_vm1, %v75_v39 }
  0xbe   :  { %v92_v41 = vpop.trf.xlu0  ;;  %v4462_v42 = vpop.trf.xlu1 }
  0xbf   :  { %3970 = vmatprep.mubr.msk.f32.mxu0 %vm300_vm1, %v92_v41 }
  0xc2   :  { %v93_v43 = vpop.trf.xlu0  ;;  %v4465_v44 = vpop.trf.xlu1 }
  0xc3   :  { %3971 = vmatmul.mubr.msk.f32.gmra.mxu0 %vm300_vm1, %v93_v43 }
  0xc6   :  { %v94_v47 = vpop.trf.xlu0  ;;  %v4474_v48 = vpop.trf.xlu1 }
  0xc7   :  { %3973 = vmatprep.mubr.msk.f32.mxu0 %vm300_vm1, %v94_v47 }
  0xca   :  { %v95_v51 = vpop.trf.xlu0  ;;  %v4483_v52 = vpop.trf.xlu1 }
  0xcb   :  { %3974 = vmatmul.mubr.msk.f32.gmra.mxu0 %vm300_vm1, %v95_v51 }
  0xce   :  { %v96_v55 = vpop.trf.xlu0  ;;  %v4492_v56 = vpop.trf.xlu1 }
  0xcf   :  { %3976 = vmatprep.mubr.msk.f32.mxu0 %vm300_vm1, %v96_v55 }
  0xd2   :  { %v97_v59 = vpop.trf.xlu0  ;;  %v4501_v60 = vpop.trf.xlu1 }
  0xd3   :  { %3977 = vmatmul.mubr.msk.f32.gmra.mxu0 %vm300_vm1, %v97_v59 }
  0xd6   :  { %v98_v61 = vpop.trf.xlu0  ;;  %v4504_v62 = vpop.trf.xlu1 }
  0xd7   :  { %3979 = vmatprep.mubr.msk.f32.mxu0 %vm300_vm1, %v98_v61 }
  0xda   :  { %v99_v63 = vpop.trf.xlu0  ;;  %v4507_v0 = vpop.trf.xlu1 }
  0xdb   :  { %3980 = vmatmul.mubr.msk.f32.gmra.mxu0 %vm300_vm1, %v99_v63 }
  0xde   :  { %v100_v1 = vpop.trf.xlu0  ;;  %v4510_v2 = vpop.trf.xlu1 }
  0xdf   :  { %3982 = vmatprep.mubr.msk.f32.mxu0 %vm300_vm1, %v100_v1 }
  0xe2   :  { %v101_v3 = vpop.trf.xlu0  ;;  %v4513_v4 = vpop.trf.xlu1 }
  0xe3   :  { %3983 = vmatmul.mubr.msk.f32.gmra.mxu0 %vm300_vm1, %v101_v3 }
  0xe6   :  { %v102_v5 = vpop.trf.xlu0  ;;  %v4516_v6 = vpop.trf.xlu1 }
  0xe7   :  { %3985 = vmatprep.mubr.msk.f32.mxu0 %vm300_vm1, %v102_v5 }
  0xea   :  { %v103_v7 = vpop.trf.xlu0  ;;  %v4519_v9 = vpop.trf.xlu1 }
  0xeb   :  { %3986 = vmatmul.mubr.msk.f32.gmra.mxu0 %vm300_vm1, %v103_v7 }
  0xee   :  { %v104_v11 = vpop.trf.xlu0  ;;  %v168_v13 = vpop.trf.xlu1 }
  0xef   :  { %3988 = vmatprep.mubr.msk.f32.mxu0 %vm300_vm1, %v104_v11 }
  0xf2   :  { %v105_v15 = vpop.trf.xlu0  ;;  %v169_v17 = vpop.trf.xlu1 }
  0xf3   :  { %3989 = vmatmul.mubr.msk.f32.gmra.mxu0 %vm300_vm1, %v105_v15 }
  0xf6   :  { %v106_v19 = vpop.trf.xlu0  ;;  %v170_v21 = vpop.trf.xlu1 }
  0xf7   :  { %3991 = vmatprep.mubr.msk.f32.mxu0 %vm300_vm1, %v106_v19 }
  0xfa   :  { %v107_v23 = vpop.trf.xlu0  ;;  %v171_v25 = vpop.trf.xlu1 }
  0xfb   :  { %3992 = vmatmul.mubr.msk.f32.gmra.mxu0 %vm300_vm1, %v107_v23 }
  0xfc   :  { %3994 = vmatprep.mubr.msk.f32.mxu0 %vm300_vm1, %v4411_v8 }
  0xfe   :  { %v188_v27 = vpop.trf.xlu0  ;;  %v4528_v29 = vpop.trf.xlu1 }
  0xff   :  { %3995 = vmatmul.mubr.msk.f32.gmra.mxu0 %vm300_vm1, %v4414_v10 }
 0x100   :  { %3997 = vmatprep.mubr.msk.f32.mxu0 %vm300_vm1, %v4417_v12 }
 0x102   :  { %v189_v31 = vpop.trf.xlu0  ;;  %v4538_v33 = vpop.trf.xlu1 }
 0x103   :  { %3998 = vmatmul.mubr.msk.f32.gmra.mxu0 %vm300_vm1, %v4420_v14 }
 0x104   :  { %4000 = vmatprep.mubr.msk.f32.mxu0 %vm300_vm1, %v4423_v16 }
 0x106   :  { %v190_v35 = vpop.trf.xlu0  ;;  %v4544_v10 = vpop.trf.xlu1 }
 0x107   :  { %4001 = vmatmul.mubr.msk.f32.gmra.mxu0 %vm300_vm1, %v4426_v18 }
 0x108   :  { %4003 = vmatprep.mubr.msk.f32.mxu0 %vm300_vm1, %v4429_v20 }
 0x10a   :  { %v191_v8 = vpop.trf.xlu0  ;;  %v4554_v14 = vpop.trf.xlu1 }
 0x10b   :  { %4004 = vmatmul.mubr.msk.f32.gmra.mxu0 %vm300_vm1, %v4432_v22 }
 0x10c   :  { %4006 = vmatprep.mubr.msk.f32.mxu0 %vm300_vm1, %v4435_v24 }
 0x10e   :  { %v192_v12 = vpop.trf.xlu0  ;;  %v4560_v20 = vpop.trf.xlu1 }
 0x10f   :  { %4007 = vmatmul.mubr.msk.f32.gmra.mxu0 %vm300_vm1, %v4438_v26 }
 0x110   :  { %4009 = vmatprep.mubr.msk.f32.mxu0 %vm300_vm1, %v4441_v28 }
 0x112   :  { %v193_v16 = vpop.trf.xlu0  ;;  %v4570_v24 = vpop.trf.xlu1 }
 0x113   :  { %4010 = vmatmul.mubr.msk.f32.gmra.mxu0 %vm300_vm1, %v4444_v30 }
 0x114   :  { %4012 = vmatprep.mubr.msk.f32.mxu0 %vm300_vm1, %v4447_v32 }
 0x116   :  { %v194_v18 = vpop.trf.xlu0  ;;  %v4576_v30 = vpop.trf.xlu1 }
 0x117   :  { %4013 = vmatmul.mubr.msk.f32.gmra.mxu0 %vm300_vm1, %v4450_v34 }
 0x118   :  { %4015 = vmatprep.mubr.msk.f32.mxu0 %vm300_vm1, %v4456_v38 }
 0x11a   :  { %v195_v22 = vpop.trf.xlu0  ;;  %v4586_v34 = vpop.trf.xlu1 }
 0x11b   :  { %4016 = vmatmul.mubr.msk.f32.gmra.mxu0 %vm300_vm1, %v4459_v40 }
 0x11c   :  { %4018 = vmatprep.mubr.msk.f32.mxu0 %vm300_vm1, %v4462_v42 }
 0x11e   :  { %v196_v26 = vpop.trf.xlu0  ;;  %v4592_v38 = vpop.trf.xlu1 }
 0x11f   :  { %4019 = vmatmul.mubr.msk.f32.gmra.mxu0 %vm300_vm1, %v4465_v44 }
 0x120   :  { %4021 = vmatprep.mubr.msk.f32.mxu0 %vm300_vm1, %v4474_v48 }
 0x122   :  { %v197_v28 = vpop.trf.xlu0  ;;  %v4601_v40 = vpop.trf.xlu1 }
 0x123   :  { %4022 = vmatmul.mubr.msk.f32.gmra.mxu0 %vm300_vm1, %v4483_v52  ;;  %v4633_v52 = vld [vmem:[%s5527_s2] ss:$0 sm:$0xff] }
 0x124   :  { %4024 = vmatprep.mubr.msk.f32.mxu0 %vm300_vm1, %v4492_v56 }
 0x126   :  { %v198_v32 = vpop.trf.xlu0  ;;  %v4605_v43 = vpop.trf.xlu1 }
 0x127   :  { %4025 = vmatmul.mubr.msk.f32.gmra.mxu0 %vm300_vm1, %v4501_v60 }
 0x128   :  { %4027 = vmatprep.mubr.msk.f32.mxu0 %vm300_vm1, %v4504_v62 }
 0x12a   :  { %v199_v36 = vpop.trf.xlu0  ;;  %v4613_v45 = vpop.trf.xlu1 }
 0x12b   :  { %4028 = vmatmul.mubr.msk.f32.gmra.mxu0 %vm300_vm1, %v4507_v0 }
 0x12c   :  { %4030 = vmatprep.mubr.msk.f32.mxu0 %vm300_vm1, %v4510_v2 }
 0x12e   :  { %v200_v37 = vpop.trf.xlu0  ;;  %v4621_v48 = vpop.trf.xlu1 }
 0x12f   :  { %4031 = vmatmul.mubr.msk.f32.gmra.mxu0 %vm300_vm1, %v4513_v4 }
 0x130   :  { %4033 = vmatprep.mubr.msk.f32.mxu0 %vm300_vm1, %v4516_v6 }
 0x132   :  { %v201_v39 = vpop.trf.xlu0  ;;  %v4636_v53 = vpop.trf.xlu1 }
 0x133   :  { %4034 = vmatmul.mubr.msk.f32.gmra.mxu0 %vm300_vm1, %v4519_v9 }
 0x134   :  { %4036 = vmatprep.mubr.msk.f32.mxu0 %vm300_vm1, %v168_v13 }
 0x136   :  { %v202_v41 = vpop.trf.xlu0  ;;  %v4645_v60 = vpop.trf.xlu1 }
 0x137   :  { %4037 = vmatmul.mubr.msk.f32.gmra.mxu0 %vm300_vm1, %v169_v17 }
 0x138   :  { %4039 = vmatprep.mubr.msk.f32.mxu0 %vm300_vm1, %v170_v21 }
 0x13a   :  { %v203_v42 = vpop.trf.xlu0  ;;  %v4656_v3 = vpop.trf.xlu1 }
 0x13b   :  { %4040 = vmatmul.mubr.msk.f32.gmra.mxu0 %vm300_vm1, %v171_v25 }
 0x13c   :  { %4042 = vmatprep.mubr.msk.f32.mxu0 %vm300_vm1, %v188_v27 }
 0x13e   :  { %v4609_v44 = vpop.trf.xlu0  ;;  %v4667_v13 = vpop.trf.xlu1 }
 0x13f   :  { %4043 = vmatmul.mubr.msk.f32.gmra.mxu0 %vm300_vm1, %v189_v31 }
 0x140   :  { %4045 = vmatprep.mubr.msk.f32.mxu0 %vm300_vm1, %v190_v35 }
 0x142   :  { %v4617_v46 = vpop.trf.xlu0  ;;  %v4681_v23 = vpop.trf.xlu1 }
 0x143   :  { %4046 = vmatmul.mubr.msk.f32.gmra.mxu0 %vm300_vm1, %v191_v8  ;;  %v4619_v47 = vpop.f32.mrf.mxu0 }
 0x144   :  { %4048 = vmatprep.mubr.msk.f32.mxu0 %vm300_vm1, %v192_v12 }
 0x145   :  { %v4625_v49 = vpop.f32.mrf.mxu0 }
 0x146   :  { %v4627_v50 = vpop.trf.xlu0  ;;  %v4692_v8 = vpop.trf.xlu1 }
 0x147   :  { %4049 = vmatmul.mubr.msk.f32.gmra.mxu0 %vm300_vm1, %v193_v16 }
 0x148   :  { %4051 = vmatprep.mubr.msk.f32.mxu0 %vm300_vm1, %v194_v18 }
 0x14a   :  { %v4642_v58 = vpop.trf.xlu0 }
 0x14b   :  { %v3951_v51 = vpop.f32.mrf.mxu0  ;;  %4052 = vmatmul.mubr.msk.f32.gmra.mxu0 %vm300_vm1, %v195_v22  ;;  %v4705_v22 = vpop.trf.xlu1 }
 0x14c   :  { %4054 = vmatprep.mubr.msk.f32.mxu0 %vm300_vm1, %v196_v26  ;;  %v771_v54 = vadd.f32 %v3951_v51, %v4633_v52 }
 0x14d   :  { %v765_v55 = vpop.f32.mrf.mxu0 }
 0x14e   :  { %v766_v56 = vadd.f32 %v4633_v52, %v765_v55  ;;  %v1397_v59 = vmax.f32 %v771_v54, 0.0  ;;  %v4652_v1 = vpop.trf.xlu0 }
 0x14f   :  { %4055 = vmatmul.mubr.msk.f32.gmra.mxu0 %vm300_vm1, %v197_v28 }
 0x150   :  { %4057 = vmatprep.mubr.msk.f32.mxu0 %vm300_vm1, %v198_v32  ;;  %v1396_v57 = vmax.f32 %v766_v56, 0.0 }
 0x152   :  { %4157 = vmatprep.mubr.msk.f32.mxu1 %vm1537_vm2, %v1396_v57  ;;  %v4663_v6 = vpop.trf.xlu0 }
 0x153   :  { %v3954_v61 = vpop.f32.mrf.mxu0  ;;  %4058 = vmatmul.mubr.msk.f32.gmra.mxu0 %vm300_vm1, %v199_v36  ;;  %4158 = vmatmul.mubr.msk.f32.vlgmr.msra.gmra.mxu1 %vm1537_vm2, %v1397_v59  ;;  %v4715_v36 = vpop.trf.xlu1 }
 0x154   :  { %4060 = vmatprep.mubr.msk.f32.mxu0 %vm300_vm1, %v200_v37  ;;  %v781_v62 = vadd.f32 %v3954_v61, %v4633_v52 }
 0x155   :  { %v775_v63 = vpop.f32.mrf.mxu0 }
 0x156   :  { %v776_v0 = vadd.f32 %v4633_v52, %v775_v63  ;;  %v1399_v4 = vmax.f32 %v781_v62, 0.0  ;;  %v4674_v19 = vpop.trf.xlu0 }
 0x157   :  { %4061 = vmatmul.mubr.msk.f32.gmra.mxu0 %vm300_vm1, %v201_v39 }
 0x158   :  { %v1398_v2 = vmax.f32 %v776_v0, 0.0  ;;  %4063 = vmatprep.mubr.msk.f32.mxu0 %vm300_vm1, %v202_v41  ;;  %v4727_v41 = vpop.trf.xlu1 }
 0x15a   :  { %4160 = vmatprep.mubr.msk.f32.mxu1 %vm1537_vm2, %v1398_v2 }
 0x15b   :  { %v3957_v5 = vpop.f32.mrf.mxu0  ;;  %4064 = vmatmul.mubr.msk.f32.gmra.mxu0 %vm300_vm1, %v203_v42  ;;  %4161 = vmatmul.mubr.msk.f32.gmra.mxu1 %vm1537_vm2, %v1399_v4 }
 0x15c   :  { %4066 = vmatprep.mubr.msk.f32.mxu0 %vm300_vm1, %v4528_v29  ;;  %v791_v7 = vadd.f32 %v3957_v5, %v4633_v52  ;;  %v4736_v54 = vpop.trf.xlu1 }
 0x15d   :  { %v785_v9 = vpop.f32.mrf.mxu0 }
 0x15e   :  { %v786_v11 = vadd.f32 %v4633_v52, %v785_v9  ;;  %v1401_v17 = vmax.f32 %v791_v7, 0.0 }
 0x15f   :  { %4067 = vmatmul.mubr.msk.f32.gmra.mxu0 %vm300_vm1, %v4538_v33  ;;  %v4689_v33 = vpop.trf.xlu0 }
 0x160   :  { %v1400_v15 = vmax.f32 %v786_v11, 0.0  ;;  %4069 = vmatprep.mubr.msk.f32.mxu0 %vm300_vm1, %v4544_v10  ;;  %v291_v59 = vpop.trf.xlu1 }
 0x162   :  { %4163 = vmatprep.mubr.msk.f32.mxu1 %vm1537_vm2, %v1400_v15 }
 0x163   :  { %v3960_v21 = vpop.f32.mrf.mxu0  ;;  %4070 = vmatmul.mubr.msk.f32.gmra.mxu0 %vm300_vm1, %v4554_v14  ;;  %4164 = vmatmul.mubr.msk.f32.gmra.mxu1 %vm1537_vm2, %v1401_v17  ;;  %v260_v18 = vpop.trf.xlu0 }
 0x164   :  { %4072 = vmatprep.mubr.msk.f32.mxu0 %vm300_vm1, %v4560_v20  ;;  %v801_v25 = vadd.f32 %v3960_v21, %v4633_v52 }
 0x165   :  { %v795_v27 = vpop.f32.mrf.mxu0 }
 0x166   :  { %v796_v29 = vadd.f32 %v4633_v52, %v795_v27  ;;  %v1403_v35 = vmax.f32 %v801_v25, 0.0 }
 0x167   :  { %4073 = vmatmul.mubr.msk.f32.gmra.mxu0 %vm300_vm1, %v4570_v24  ;;  %v261_v28 = vpop.trf.xlu0 }
 0x168   :  { %v1402_v31 = vmax.f32 %v796_v29, 0.0  ;;  %4075 = vmatprep.mubr.msk.f32.mxu0 %vm300_vm1, %v4576_v30 }
 0x16a   :  { %4166 = vmatprep.mubr.msk.f32.mxu1 %vm1537_vm2, %v1402_v31 }
 0x16b   :  { %v3963_v10 = vpop.f32.mrf.mxu0  ;;  %4076 = vmatmul.mubr.msk.f32.gmra.mxu0 %vm300_vm1, %v4586_v34  ;;  %4167 = vmatmul.mubr.msk.f32.gmra.mxu1 %vm1537_vm2, %v1403_v35  ;;  %v262_v39 = vpop.trf.xlu0 }
 0x16c   :  { %4078 = vmatprep.mubr.msk.f32.mxu0 %vm300_vm1, %v4592_v38  ;;  %v811_v12 = vadd.f32 %v3963_v10, %v4633_v52 }
 0x16d   :  { %v805_v14 = vpop.f32.mrf.mxu0 }
 0x16e   :  { %v806_v16 = vadd.f32 %v4633_v52, %v805_v14  ;;  %v1405_v24 = vmax.f32 %v811_v12, 0.0 }
 0x16f   :  { %4079 = vmatmul.mubr.msk.f32.gmra.mxu0 %vm300_vm1, %v4601_v40  ;;  %v263_v51 = vpop.trf.xlu0 }
 0x170   :  { %v1404_v20 = vmax.f32 %v806_v16, 0.0  ;;  %4081 = vmatprep.mubr.msk.f32.mxu0 %vm300_vm1, %v4605_v43 }
 0x172   :  { %4169 = vmatprep.mubr.msk.f32.mxu1 %vm1537_vm2, %v1404_v20 }
 0x173   :  { %v3966_v26 = vpop.f32.mrf.mxu0  ;;  %4082 = vmatmul.mubr.msk.f32.gmra.mxu0 %vm300_vm1, %v4613_v45  ;;  %4170 = vmatmul.mubr.msk.f32.gmra.mxu1 %vm1537_vm2, %v1405_v24  ;;  %v264_v56 = vpop.trf.xlu0 }
 0x174   :  { %4084 = vmatprep.mubr.msk.f32.mxu0 %vm300_vm1, %v4621_v48  ;;  %v821_v30 = vadd.f32 %v3966_v26, %v4633_v52 }
 0x175   :  { %v815_v32 = vpop.f32.mrf.mxu0 }
 0x176   :  { %v816_v34 = vadd.f32 %v4633_v52, %v815_v32  ;;  %v1407_v38 = vmax.f32 %v821_v30, 0.0 }
 0x177   :  { %4085 = vmatmul.mubr.msk.f32.gmra.mxu0 %vm300_vm1, %v4636_v53  ;;  %v265_v61 = vpop.trf.xlu0 }
 0x178   :  { %v1406_v37 = vmax.f32 %v816_v34, 0.0  ;;  %4087 = vmatprep.mubr.msk.f32.mxu0 %vm300_vm1, %v4645_v60 }
 0x17a   :  { %4172 = vmatprep.mubr.msk.f32.mxu1 %vm1537_vm2, %v1406_v37 }
 0x17b   :  { %v3969_v40 = vpop.f32.mrf.mxu0  ;;  %4088 = vmatmul.mubr.msk.f32.gmra.mxu0 %vm300_vm1, %v4656_v3  ;;  %4173 = vmatmul.mubr.msk.f32.gmra.mxu1 %vm1537_vm2, %v1407_v38  ;;  %v266_v4 = vpop.trf.xlu0 }
 0x17c   :  { %4090 = vmatprep.mubr.msk.f32.mxu0 %vm300_vm1, %v4609_v44  ;;  %v831_v42 = vadd.f32 %v3969_v40, %v4633_v52 }
 0x17d   :  { %v825_v43 = vpop.f32.mrf.mxu0 }
 0x17e   :  { %v826_v45 = vadd.f32 %v4633_v52, %v825_v43  ;;  %v1409_v53 = vmax.f32 %v831_v42, 0.0  ;;  %v761_v43 = vadd.f32 %v4619_v47, %v4633_v52 }
 0x17f   :  { %4091 = vmatmul.mubr.msk.f32.gmra.mxu0 %vm300_vm1, %v4617_v46  ;;  %v267_v17 = vpop.trf.xlu0 }
 0x180   :  { %v1408_v48 = vmax.f32 %v826_v45, 0.0  ;;  %4093 = vmatprep.mubr.msk.f32.mxu0 %vm300_vm1, %v4627_v50 }
 0x182   :  { %4175 = vmatprep.mubr.msk.f32.mxu1 %vm1537_vm2, %v1408_v48 }
 0x183   :  { %v3972_v44 = vpop.f32.mrf.mxu0  ;;  %4094 = vmatmul.mubr.msk.f32.gmra.mxu0 %vm300_vm1, %v4642_v58  ;;  %4176 = vmatmul.mubr.msk.f32.gmra.mxu1 %vm1537_vm2, %v1409_v53 }
 0x184   :  { %4096 = vmatprep.mubr.msk.f32.mxu0 %vm300_vm1, %v4652_v1  ;;  %v841_v46 = vadd.f32 %v3972_v44, %v4633_v52  ;;  %v292_v1 = vpop.trf.xlu1 }
 0x185   :  { %v835_v55 = vpop.f32.mrf.mxu0 }
 0x186   :  { %v836_v50 = vadd.f32 %v4633_v52, %v835_v55  ;;  %v1411_v58 = vmax.f32 %v841_v46, 0.0 }
 0x187   :  { %4097 = vmatmul.mubr.msk.f32.gmra.mxu0 %vm300_vm1, %v4663_v6 }
 0x188   :  { %v1410_v57 = vmax.f32 %v836_v50, 0.0  ;;  %4099 = vmatprep.mubr.msk.f32.mxu0 %vm300_vm1, %v4674_v19  ;;  %v293_v6 = vpop.trf.xlu1 }
 0x18a   :  { %4178 = vmatprep.mubr.msk.f32.mxu1 %vm1537_vm2, %v1410_v57 }
 0x18b   :  { %v3975_v60 = vpop.f32.mrf.mxu0  ;;  %4100 = vmatmul.mubr.msk.f32.gmra.mxu0 %vm300_vm1, %v4689_v33  ;;  %4179 = vmatmul.mubr.msk.f32.gmra.mxu1 %vm1537_vm2, %v1411_v58 }
 0x18c   :  { %4102 = vmatprep.mubr.msk.f32.mxu0 %vm300_vm1, %v260_v18  ;;  %v851_v62 = vadd.f32 %v3975_v60, %v4633_v52  ;;  %v294_v21 = vpop.trf.xlu1 }
 0x18d   :  { %v845_v63 = vpop.f32.mrf.mxu0 }
 0x18e   :  { %v846_v0 = vadd.f32 %v4633_v52, %v845_v63  ;;  %v1413_v3 = vmax.f32 %v851_v62, 0.0 }
 0x18f   :  { %4103 = vmatmul.mubr.msk.f32.gmra.mxu0 %vm300_vm1, %v261_v28 }
 0x190   :  { %v1412_v2 = vmax.f32 %v846_v0, 0.0  ;;  %4105 = vmatprep.mubr.msk.f32.mxu0 %vm300_vm1, %v262_v39  ;;  %v295_v35 = vpop.trf.xlu1  ;;  %v756_v39 = vadd.f32 %v4633_v52, %v4625_v49  ;;  %v1395_v49 = vmax.f32 %v761_v43, 0.0 }
 0x192   :  { %4181 = vmatprep.mubr.msk.f32.mxu1 %vm1537_vm2, %v1412_v2  ;;  %v1394_v48 = vmax.f32 %v756_v39, 0.0 }
 0x193   :  { %v3978_v5 = vpop.f32.mrf.mxu0  ;;  %4106 = vmatmul.mubr.msk.f32.gmra.mxu0 %vm300_vm1, %v263_v51  ;;  %4182 = vmatmul.mubr.msk.f32.gmra.mxu1 %vm1537_vm2, %v1413_v3 }
 0x194   :  { %4108 = vmatprep.mubr.msk.f32.mxu0 %vm300_vm1, %v264_v56  ;;  %v861_v7 = vadd.f32 %v3978_v5, %v4633_v52  ;;  %v296_v16 = vpop.trf.xlu1 }
 0x195   :  { %v855_v9 = vpop.f32.mrf.mxu0 }
 0x196   :  { %v856_v11 = vadd.f32 %v4633_v52, %v855_v9  ;;  %v1415_v19 = vmax.f32 %v861_v7, 0.0 }
 0x197   :  { %4109 = vmatmul.mubr.msk.f32.gmra.mxu0 %vm300_vm1, %v265_v61 }
 0x198   :  { %v1414_v15 = vmax.f32 %v856_v11, 0.0  ;;  %4111 = vmatprep.mubr.msk.f32.mxu0 %vm300_vm1, %v266_v4 }
 0x19a   :  { %4184 = vmatprep.mubr.msk.f32.mxu1 %vm1537_vm2, %v1414_v15 }
 0x19b   :  { %v3981_v25 = vpop.f32.mrf.mxu0  ;;  %4112 = vmatmul.mubr.msk.f32.gmra.mxu0 %vm300_vm1, %v267_v17  ;;  %4185 = vmatmul.mubr.msk.f32.gmra.mxu1 %vm1537_vm2, %v1415_v19 }
 0x19c   :  { %4114 = vmatprep.mubr.msk.f32.mxu0 %vm300_vm1, %v4667_v13  ;;  %v871_v27 = vadd.f32 %v3981_v25, %v4633_v52 }
 0x19d   :  { %v865_v29 = vpop.f32.mrf.mxu0 }
 0x19e   :  { %v866_v31 = vadd.f32 %v4633_v52, %v865_v29  ;;  %v1417_v10 = vmax.f32 %v871_v27, 0.0 }
 0x19f   :  { %4115 = vmatmul.mubr.msk.f32.gmra.mxu0 %vm300_vm1, %v4681_v23 }
 0x1a0   :  { %v1416_v33 = vmax.f32 %v866_v31, 0.0  ;;  %4117 = vmatprep.mubr.msk.f32.mxu0 %vm300_vm1, %v4692_v8 }
 0x1a2   :  { %4187 = vmatprep.mubr.msk.f32.mxu1 %vm1537_vm2, %v1416_v33 }
 0x1a3   :  { %v3984_v12 = vpop.f32.mrf.mxu0  ;;  %4118 = vmatmul.mubr.msk.f32.gmra.mxu0 %vm300_vm1, %v4705_v22  ;;  %4188 = vmatmul.mubr.msk.f32.gmra.mxu1 %vm1537_vm2, %v1417_v10  ;;  %v297_v22 = vpop.trf.xlu1 }
 0x1a4   :  { %4120 = vmatprep.mubr.msk.f32.mxu0 %vm300_vm1, %v4715_v36  ;;  %v881_v13 = vadd.f32 %v3984_v12, %v4633_v52 }
 0x1a5   :  { %v875_v23 = vpop.f32.mrf.mxu0 }
 0x1a6   :  { %v876_v14 = vadd.f32 %v4633_v52, %v875_v23  ;;  %v1419_v18 = vmax.f32 %v881_v13, 0.0 }
 0x1a7   :  { %4121 = vmatmul.mubr.msk.f32.gmra.mxu0 %vm300_vm1, %v4727_v41  ;;  %v298_v34 = vpop.trf.xlu1 }
 0x1a8   :  { %v1418_v8 = vmax.f32 %v876_v14, 0.0  ;;  %4123 = vmatprep.mubr.msk.f32.mxu0 %vm300_vm1, %v4736_v54 }
 0x1aa   :  { %4190 = vmatprep.mubr.msk.f32.mxu1 %vm1537_vm2, %v1418_v8 }
 0x1ab   :  { %v3987_v20 = vpop.f32.mrf.mxu0  ;;  %4124 = vmatmul.mubr.msk.f32.gmra.mxu0 %vm300_vm1, %v291_v59  ;;  %4191 = vmatmul.mubr.msk.f32.gmra.mxu1 %vm1537_vm2, %v1419_v18  ;;  %v299_v42 = vpop.trf.xlu1 }
 0x1ac   :  { %4126 = vmatprep.mubr.msk.f32.mxu0 %vm300_vm1, %v292_v1  ;;  %v891_v24 = vadd.f32 %v3987_v20, %v4633_v52 }
 0x1ad   :  { %v885_v26 = vpop.f32.mrf.mxu0 }
 0x1ae   :  { %v886_v28 = vadd.f32 %v4633_v52, %v885_v26  ;;  %v1421_v32 = vmax.f32 %v891_v24, 0.0 }
 0x1af   :  { %4127 = vmatmul.mubr.msk.f32.gmra.mxu0 %vm300_vm1, %v293_v6 }
 0x1b0   :  { %v1420_v30 = vmax.f32 %v886_v28, 0.0  ;;  %4129 = vmatprep.mubr.msk.f32.mxu0 %vm300_vm1, %v294_v21 }
 0x1b2   :  { %4193 = vmatprep.mubr.msk.f32.mxu1 %vm1537_vm2, %v1420_v30 }
 0x1b3   :  { %v3990_v36 = vpop.f32.mrf.mxu0  ;;  %4130 = vmatmul.mubr.msk.f32.gmra.mxu0 %vm300_vm1, %v295_v35  ;;  %4194 = vmatmul.mubr.msk.f32.gmra.mxu1 %vm1537_vm2, %v1421_v32 }
 0x1b4   :  { %4132 = vmatprep.mubr.msk.f32.mxu0 %vm300_vm1, %v296_v16  ;;  %v901_v37 = vadd.f32 %v3990_v36, %v4633_v52 }
 0x1b5   :  { %v895_v38 = vpop.f32.mrf.mxu0 }
 0x1b6   :  { %v896_v40 = vadd.f32 %v4633_v52, %v895_v38  ;;  %v1423_v45 = vmax.f32 %v901_v37, 0.0 }
 0x1b7   :  { %4133 = vmatmul.mubr.msk.f32.gmra.mxu0 %vm300_vm1, %v297_v22 }
 0x1b8   :  { %v1422_v41 = vmax.f32 %v896_v40, 0.0  ;;  %4135 = vmatprep.mubr.msk.f32.mxu0 %vm300_vm1, %v298_v34 }
 0x1ba   :  { %4196 = vmatprep.mubr.msk.f32.mxu1 %vm1537_vm2, %v1422_v41 }
 0x1bb   :  { %v3993_v51 = vpop.f32.mrf.mxu0  ;;  %4136 = vmatmul.mubr.msk.f32.gmra.mxu0 %vm300_vm1, %v299_v42  ;;  %4197 = vmatmul.mubr.msk.f32.gmra.mxu1 %vm1537_vm2, %v1423_v45 }
 0x1bc   :  { %4154 = vmatprep.mubr.msk.f32.mxu0 %vm1537_vm2, %v1394_v48  ;;  %v911_v53 = vadd.f32 %v3993_v51, %v4633_v52 }
 0x1bd   :  { %v905_v54 = vpop.f32.mrf.mxu0 }
 0x1be   :  { %v906_v44 = vadd.f32 %v4633_v52, %v905_v54  ;;  %v1425_v55 = vmax.f32 %v911_v53, 0.0 }
 0x1bf   :  { %v3996_v46 = vpop.f32.mrf.mxu0  ;;  %4155 = vmatmul.mubr.msk.f32.vlgmr.msra.gmra.mxu0 %vm1537_vm2, %v1395_v49 }
 0x1c0   :  { %v1424_v47 = vmax.f32 %v906_v44, 0.0  ;;  %v921_v50 = vadd.f32 %v3996_v46, %v4633_v52 }
 0x1c1   :  { %v915_v56 = vpop.f32.mrf.mxu0 }
 0x1c2   :  { %v916_v57 = vadd.f32 %v4633_v52, %v915_v56  ;;  %4199 = vmatprep.mubr.msk.f32.mxu1 %vm1537_vm2, %v1424_v47  ;;  %v1427_v60 = vmax.f32 %v921_v50, 0.0 }
 0x1c3   :  { %v3999_v59 = vpop.f32.mrf.mxu0  ;;  %4200 = vmatmul.mubr.msk.f32.gmra.mxu1 %vm1537_vm2, %v1425_v55 }
 0x1c4   :  { %v1426_v58 = vmax.f32 %v916_v57, 0.0  ;;  %v931_v61 = vadd.f32 %v3999_v59, %v4633_v52 }
 0x1c5   :  { %v925_v62 = vpop.f32.mrf.mxu0 }
 0x1c6   :  { %v926_v63 = vadd.f32 %v4633_v52, %v925_v62  ;;  %4202 = vmatprep.mubr.msk.f32.mxu1 %vm1537_vm2, %v1426_v58  ;;  %v1429_v2 = vmax.f32 %v931_v61, 0.0 }
 0x1c7   :  { %v4002_v0 = vpop.f32.mrf.mxu0  ;;  %4203 = vmatmul.mubr.msk.f32.gmra.mxu1 %vm1537_vm2, %v1427_v60 }
 0x1c8   :  { %v1428_v1 = vmax.f32 %v926_v63, 0.0  ;;  %v941_v3 = vadd.f32 %v4002_v0, %v4633_v52 }
 0x1c9   :  { %v935_v4 = vpop.f32.mrf.mxu0 }
 0x1ca   :  { %v936_v5 = vadd.f32 %v4633_v52, %v935_v4  ;;  %4205 = vmatprep.mubr.msk.f32.mxu1 %vm1537_vm2, %v1428_v1  ;;  %v1431_v9 = vmax.f32 %v941_v3, 0.0 }
 0x1cb   :  { %v4005_v6 = vpop.f32.mrf.mxu0  ;;  %4206 = vmatmul.mubr.msk.f32.gmra.mxu1 %vm1537_vm2, %v1429_v2 }
 0x1cc   :  { %v1430_v7 = vmax.f32 %v936_v5, 0.0  ;;  %v951_v11 = vadd.f32 %v4005_v6, %v4633_v52 }
 0x1cd   :  { %v945_v15 = vpop.f32.mrf.mxu0 }
 0x1ce   :  { %v946_v17 = vadd.f32 %v4633_v52, %v945_v15  ;;  %4208 = vmatprep.mubr.msk.f32.mxu1 %vm1537_vm2, %v1430_v7  ;;  %v1433_v25 = vmax.f32 %v951_v11, 0.0 }
 0x1cf   :  { %v4008_v19 = vpop.f32.mrf.mxu0  ;;  %4209 = vmatmul.mubr.msk.f32.gmra.mxu1 %vm1537_vm2, %v1431_v9 }
 0x1d0   :  { %v1432_v21 = vmax.f32 %v946_v17, 0.0  ;;  %v961_v27 = vadd.f32 %v4008_v19, %v4633_v52 }
 0x1d1   :  { %v955_v29 = vpop.f32.mrf.mxu0 }
 0x1d2   :  { %v956_v31 = vadd.f32 %v4633_v52, %v955_v29  ;;  %4211 = vmatprep.mubr.msk.f32.mxu1 %vm1537_vm2, %v1432_v21  ;;  %v1435_v10 = vmax.f32 %v961_v27, 0.0 }
 0x1d3   :  { %v4011_v33 = vpop.f32.mrf.mxu0  ;;  %4212 = vmatmul.mubr.msk.f32.gmra.mxu1 %vm1537_vm2, %v1433_v25 }
 0x1d4   :  { %v1434_v35 = vmax.f32 %v956_v31, 0.0  ;;  %v971_v12 = vadd.f32 %v4011_v33, %v4633_v52 }
 0x1d5   :  { %v965_v13 = vpop.f32.mrf.mxu0 }
 0x1d6   :  { %v966_v23 = vadd.f32 %v4633_v52, %v965_v13  ;;  %4214 = vmatprep.mubr.msk.f32.mxu1 %vm1537_vm2, %v1434_v35  ;;  %v1437_v8 = vmax.f32 %v971_v12, 0.0 }
 0x1d7   :  { %v4014_v14 = vpop.f32.mrf.mxu0  ;;  %4215 = vmatmul.mubr.msk.f32.gmra.mxu1 %vm1537_vm2, %v1435_v10 }
 0x1d8   :  { %v1436_v16 = vmax.f32 %v966_v23, 0.0  ;;  %v981_v18 = vadd.f32 %v4014_v14, %v4633_v52 }
 0x1d9   :  { %v975_v20 = vpop.f32.mrf.mxu0 }
 0x1da   :  { %v976_v22 = vadd.f32 %v4633_v52, %v975_v20  ;;  %4217 = vmatprep.mubr.msk.f32.mxu1 %vm1537_vm2, %v1436_v16  ;;  %v1439_v28 = vmax.f32 %v981_v18, 0.0 }
 0x1db   :  { %v4017_v24 = vpop.f32.mrf.mxu0  ;;  %4218 = vmatmul.mubr.msk.f32.gmra.mxu1 %vm1537_vm2, %v1437_v8 }
 0x1dc   :  { %v1438_v26 = vmax.f32 %v976_v22, 0.0  ;;  %v991_v30 = vadd.f32 %v4017_v24, %v4633_v52 }
 0x1dd   :  { %v985_v32 = vpop.f32.mrf.mxu0 }
 0x1de   :  { %v986_v34 = vadd.f32 %v4633_v52, %v985_v32  ;;  %4220 = vmatprep.mubr.msk.f32.mxu1 %vm1537_vm2, %v1438_v26  ;;  %v1441_v38 = vmax.f32 %v991_v30, 0.0 }
 0x1df   :  { %v4020_v36 = vpop.f32.mrf.mxu0  ;;  %4221 = vmatmul.mubr.msk.f32.gmra.mxu1 %vm1537_vm2, %v1439_v28 }
 0x1e0   :  { %v1440_v37 = vmax.f32 %v986_v34, 0.0  ;;  %v1001_v39 = vadd.f32 %v4020_v36, %v4633_v52 }
 0x1e1   :  { %v995_v40 = vpop.f32.mrf.mxu0 }
 0x1e2   :  { %v996_v41 = vadd.f32 %v4633_v52, %v995_v40  ;;  %4223 = vmatprep.mubr.msk.f32.mxu1 %vm1537_vm2, %v1440_v37  ;;  %v1443_v45 = vmax.f32 %v1001_v39, 0.0 }
 0x1e3   :  { %v4023_v42 = vpop.f32.mrf.mxu0  ;;  %4224 = vmatmul.mubr.msk.f32.gmra.mxu1 %vm1537_vm2, %v1441_v38 }
 0x1e4   :  { %v1442_v43 = vmax.f32 %v996_v41, 0.0  ;;  %v1011_v48 = vadd.f32 %v4023_v42, %v4633_v52 }
 0x1e5   :  { %v1005_v51 = vpop.f32.mrf.mxu0 }
 0x1e6   :  { %v1006_v49 = vadd.f32 %v4633_v52, %v1005_v51  ;;  %4226 = vmatprep.mubr.msk.f32.mxu1 %vm1537_vm2, %v1442_v43  ;;  %v1445_v44 = vmax.f32 %v1011_v48, 0.0 }
 0x1e7   :  { %v4026_v53 = vpop.f32.mrf.mxu0  ;;  %4227 = vmatmul.mubr.msk.f32.gmra.mxu1 %vm1537_vm2, %v1443_v45 }
 0x1e8   :  { %v1444_v54 = vmax.f32 %v1006_v49, 0.0  ;;  %v1021_v46 = vadd.f32 %v4026_v53, %v4633_v52 }
 0x1e9   :  { %v1015_v47 = vpop.f32.mrf.mxu0 }
 0x1ea   :  { %v1016_v55 = vadd.f32 %v4633_v52, %v1015_v47  ;;  %4229 = vmatprep.mubr.msk.f32.mxu1 %vm1537_vm2, %v1444_v54  ;;  %v1447_v57 = vmax.f32 %v1021_v46, 0.0 }
 0x1eb   :  { %v4029_v50 = vpop.f32.mrf.mxu0  ;;  %4230 = vmatmul.mubr.msk.f32.gmra.mxu1 %vm1537_vm2, %v1445_v44  ;;  %v4900_v44 = vld [vmem:[%s5529_s4] ss:$0 sm:$0xff] }
 0x1ec   :  { %v1446_v56 = vmax.f32 %v1016_v55, 0.0  ;;  %v1031_v59 = vadd.f32 %v4029_v50, %v4633_v52 }
 0x1ed   :  { %v1025_v58 = vpop.f32.mrf.mxu0 }
 0x1ee   :  { %v1026_v60 = vadd.f32 %v4633_v52, %v1025_v58  ;;  %4232 = vmatprep.mubr.msk.f32.mxu1 %vm1537_vm2, %v1446_v56  ;;  %v1449_v63 = vmax.f32 %v1031_v59, 0.0 }
 0x1ef   :  { %v4032_v61 = vpop.f32.mrf.mxu0  ;;  %4233 = vmatmul.mubr.msk.f32.gmra.mxu1 %vm1537_vm2, %v1447_v57 }
 0x1f0   :  { %v1448_v62 = vmax.f32 %v1026_v60, 0.0  ;;  %v1041_v0 = vadd.f32 %v4032_v61, %v4633_v52 }
 0x1f1   :  { %v1035_v1 = vpop.f32.mrf.mxu0 }
 0x1f2   :  { %v1036_v2 = vadd.f32 %v4633_v52, %v1035_v1  ;;  %4235 = vmatprep.mubr.msk.f32.mxu1 %vm1537_vm2, %v1448_v62  ;;  %v1451_v5 = vmax.f32 %v1041_v0, 0.0 }
 0x1f3   :  { %v4035_v3 = vpop.f32.mrf.mxu0  ;;  %4236 = vmatmul.mubr.msk.f32.gmra.mxu1 %vm1537_vm2, %v1449_v63 }
 0x1f4   :  { %v1450_v4 = vmax.f32 %v1036_v2, 0.0  ;;  %v1051_v6 = vadd.f32 %v4035_v3, %v4633_v52 }
 0x1f5   :  { %v1045_v7 = vpop.f32.mrf.mxu0 }
 0x1f6   :  { %v1046_v9 = vadd.f32 %v4633_v52, %v1045_v7  ;;  %4238 = vmatprep.mubr.msk.f32.mxu1 %vm1537_vm2, %v1450_v4  ;;  %v1453_v17 = vmax.f32 %v1051_v6, 0.0 }
 0x1f7   :  { %v4038_v11 = vpop.f32.mrf.mxu0  ;;  %4239 = vmatmul.mubr.msk.f32.gmra.mxu1 %vm1537_vm2, %v1451_v5 }
 0x1f8   :  { %v1452_v15 = vmax.f32 %v1046_v9, 0.0  ;;  %v1061_v19 = vadd.f32 %v4038_v11, %v4633_v52 }
 0x1f9   :  { %v1055_v21 = vpop.f32.mrf.mxu0 }
 0x1fa   :  { %v1056_v25 = vadd.f32 %v4633_v52, %v1055_v21  ;;  %4241 = vmatprep.mubr.msk.f32.mxu1 %vm1537_vm2, %v1452_v15  ;;  %v1455_v31 = vmax.f32 %v1061_v19, 0.0 }
 0x1fb   :  { %v4041_v27 = vpop.f32.mrf.mxu0  ;;  %4242 = vmatmul.mubr.msk.f32.gmra.mxu1 %vm1537_vm2, %v1453_v17 }
 0x1fc   :  { %v1454_v29 = vmax.f32 %v1056_v25, 0.0  ;;  %v1071_v33 = vadd.f32 %v4041_v27, %v4633_v52 }
 0x1fd   :  { %v1065_v35 = vpop.f32.mrf.mxu0 }
 0x1fe   :  { %v1066_v10 = vadd.f32 %v4633_v52, %v1065_v35  ;;  %4244 = vmatprep.mubr.msk.f32.mxu1 %vm1537_vm2, %v1454_v29  ;;  %v1457_v23 = vmax.f32 %v1071_v33, 0.0 }
 0x1ff   :  { %v4044_v12 = vpop.f32.mrf.mxu0  ;;  %4245 = vmatmul.mubr.msk.f32.gmra.mxu1 %vm1537_vm2, %v1455_v31 }
 0x200   :  { %v1456_v13 = vmax.f32 %v1066_v10, 0.0  ;;  %v1081_v14 = vadd.f32 %v4044_v12, %v4633_v52 }
 0x201   :  { %v1075_v16 = vpop.f32.mrf.mxu0 }
 0x202   :  { %v1076_v8 = vadd.f32 %v4633_v52, %v1075_v16  ;;  %4247 = vmatprep.mubr.msk.f32.mxu1 %vm1537_vm2, %v1456_v13  ;;  %v1459_v22 = vmax.f32 %v1081_v14, 0.0 }
 0x203   :  { %v4047_v18 = vpop.f32.mrf.mxu0  ;;  %4248 = vmatmul.mubr.msk.f32.gmra.mxu1 %vm1537_vm2, %v1457_v23 }
 0x204   :  { %v1458_v20 = vmax.f32 %v1076_v8, 0.0  ;;  %v1091_v24 = vadd.f32 %v4047_v18, %v4633_v52 }
 0x205   :  { %v1085_v26 = vpop.f32.mrf.mxu0 }
 0x206   :  { %v1086_v28 = vadd.f32 %v4633_v52, %v1085_v26  ;;  %4250 = vmatprep.mubr.msk.f32.mxu1 %vm1537_vm2, %v1458_v20  ;;  %v1461_v34 = vmax.f32 %v1091_v24, 0.0 }
 0x207   :  { %v4050_v30 = vpop.f32.mrf.mxu0  ;;  %4251 = vmatmul.mubr.msk.f32.gmra.mxu1 %vm1537_vm2, %v1459_v22 }
 0x208   :  { %v1460_v32 = vmax.f32 %v1086_v28, 0.0  ;;  %v1101_v36 = vadd.f32 %v4050_v30, %v4633_v52 }
 0x209   :  { %v1095_v37 = vpop.f32.mrf.mxu0 }
 0x20a   :  { %v1096_v38 = vadd.f32 %v4633_v52, %v1095_v37  ;;  %4253 = vmatprep.mubr.msk.f32.mxu1 %vm1537_vm2, %v1460_v32  ;;  %v1463_v41 = vmax.f32 %v1101_v36, 0.0 }
 0x20b   :  { %v4053_v39 = vpop.f32.mrf.mxu0  ;;  %4254 = vmatmul.mubr.msk.f32.gmra.mxu1 %vm1537_vm2, %v1461_v34 }
 0x20c   :  { %v1462_v40 = vmax.f32 %v1096_v38, 0.0  ;;  %v1111_v42 = vadd.f32 %v4053_v39, %v4633_v52 }
 0x20d   :  { %v1105_v43 = vpop.f32.mrf.mxu0 }
 0x20e   :  { %v1106_v45 = vadd.f32 %v4633_v52, %v1105_v43  ;;  %4256 = vmatprep.mubr.msk.f32.mxu1 %vm1537_vm2, %v1462_v40  ;;  %v1465_v49 = vmax.f32 %v1111_v42, 0.0 }
 0x20f   :  { %v4056_v48 = vpop.f32.mrf.mxu0  ;;  %4257 = vmatmul.mubr.msk.f32.gmra.mxu1 %vm1537_vm2, %v1463_v41 }
 0x210   :  { %v1464_v51 = vmax.f32 %v1106_v45, 0.0  ;;  %v1121_v53 = vadd.f32 %v4056_v48, %v4633_v52 }
 0x211   :  { %v1115_v54 = vpop.f32.mrf.mxu0 }
 0x212   :  { %v1116_v46 = vadd.f32 %v4633_v52, %v1115_v54  ;;  %4259 = vmatprep.mubr.msk.f32.mxu1 %vm1537_vm2, %v1464_v51  ;;  %v1467_v57 = vmax.f32 %v1121_v53, 0.0 }
 0x213   :  { %v4059_v47 = vpop.f32.mrf.mxu0  ;;  %v4159_v55 = vpop.f32.mrf.mxu1  ;;  %4260 = vmatmul.mubr.msk.f32.gmra.mxu1 %vm1537_vm2, %v1465_v49 }
 0x214   :  { %v1466_v50 = vmax.f32 %v1116_v46, 0.0  ;;  %v2004_v56 = vadd.f32 %v4159_v55, %v4900_v44  ;;  %v1131_v59 = vadd.f32 %v4059_v47, %v4633_v52 }
 0x215   :  { %v1125_v58 = vpop.f32.mrf.mxu0  ;;  %v1998_v60 = vpop.f32.mrf.mxu1 }
 0x216   :  { %v2630_v61 = vmax.f32 %v2004_v56, 0.0  ;;  %v1126_v62 = vadd.f32 %v4633_v52, %v1125_v58  ;;  %v1999_v63 = vadd.f32 %v4900_v44, %v1998_v60  ;;  %4262 = vmatprep.mubr.msk.f32.mxu1 %vm1537_vm2, %v1466_v50  ;;  %v1469_v3 = vmax.f32 %v1131_v59, 0.0 }
 0x217   :  { %v4062_v0 = vpop.f32.mrf.mxu0  ;;  %4263 = vmatmul.mubr.msk.f32.gmra.mxu1 %vm1537_vm2, %v1467_v57 }
 0x218   :  { %3168 = vst [vmem:[%s5530_s5 + $0x18] sm:$0xff] %v2630_v61  ;;  %v1468_v1 = vmax.f32 %v1126_v62, 0.0  ;;  %v2629_v2 = vmax.f32 %v1999_v63, 0.0  ;;  %v1141_v4 = vadd.f32 %v4062_v0, %v4633_v52 }
 0x219   :  { %v1135_v5 = vpop.f32.mrf.mxu0 }
 0x21a   :  { %3166 = vst [vmem:[%s5530_s5 + $0x10] sm:$0xff] %v2629_v2  ;;  %v1136_v6 = vadd.f32 %v4633_v52, %v1135_v5  ;;  %4265 = vmatprep.mubr.msk.f32.mxu1 %vm1537_vm2, %v1468_v1  ;;  %v1471_v17 = vmax.f32 %v1141_v4, 0.0 }
 0x21b   :  { %v4065_v7 = vpop.f32.mrf.mxu0  ;;  %v4162_v9 = vpop.f32.mrf.mxu1  ;;  %4266 = vmatmul.mubr.msk.f32.gmra.mxu1 %vm1537_vm2, %v1469_v3 }
 0x21c   :  { %v1470_v11 = vmax.f32 %v1136_v6, 0.0  ;;  %v2014_v15 = vadd.f32 %v4162_v9, %v4900_v44  ;;  %v1151_v19 = vadd.f32 %v4065_v7, %v4633_v52 }
 0x21d   :  { %v1145_v21 = vpop.f32.mrf.mxu0  ;;  %v2008_v25 = vpop.f32.mrf.mxu1 }
 0x21e   :  { %v2632_v27 = vmax.f32 %v2014_v15, 0.0  ;;  %v1146_v29 = vadd.f32 %v4633_v52, %v1145_v21  ;;  %v2009_v31 = vadd.f32 %v4900_v44, %v2008_v25  ;;  %4268 = vmatprep.mubr.msk.f32.mxu1 %vm1537_vm2, %v1470_v11  ;;  %v1473_v12 = vmax.f32 %v1151_v19, 0.0 }
 0x21f   :  { %v4068_v33 = vpop.f32.mrf.mxu0  ;;  %4269 = vmatmul.mubr.msk.f32.gmra.mxu1 %vm1537_vm2, %v1471_v17 }
 0x220   :  { %3172 = vst [vmem:[%s5530_s5 + $0x28] sm:$0xff] %v2632_v27  ;;  %v1472_v35 = vmax.f32 %v1146_v29, 0.0  ;;  %v2631_v10 = vmax.f32 %v2009_v31, 0.0  ;;  %v1161_v13 = vadd.f32 %v4068_v33, %v4633_v52 }
 0x221   :  { %v1155_v23 = vpop.f32.mrf.mxu0 }
 0x222   :  { %3170 = vst [vmem:[%s5530_s5 + $0x20] sm:$0xff] %v2631_v10  ;;  %v1156_v14 = vadd.f32 %v4633_v52, %v1155_v23  ;;  %4271 = vmatprep.mubr.msk.f32.mxu1 %vm1537_vm2, %v1472_v35  ;;  %v1475_v22 = vmax.f32 %v1161_v13, 0.0 }
 0x223   :  { %v4071_v16 = vpop.f32.mrf.mxu0  ;;  %v4165_v8 = vpop.f32.mrf.mxu1  ;;  %4272 = vmatmul.mubr.msk.f32.gmra.mxu1 %vm1537_vm2, %v1473_v12 }
 0x224   :  { %v1474_v18 = vmax.f32 %v1156_v14, 0.0  ;;  %v2024_v20 = vadd.f32 %v4165_v8, %v4900_v44  ;;  %v1171_v24 = vadd.f32 %v4071_v16, %v4633_v52 }
 0x225   :  { %v1165_v26 = vpop.f32.mrf.mxu0  ;;  %v2018_v28 = vpop.f32.mrf.mxu1 }
 0x226   :  { %v2634_v30 = vmax.f32 %v2024_v20, 0.0  ;;  %v1166_v32 = vadd.f32 %v4633_v52, %v1165_v26  ;;  %v2019_v34 = vadd.f32 %v4900_v44, %v2018_v28  ;;  %4274 = vmatprep.mubr.msk.f32.mxu1 %vm1537_vm2, %v1474_v18  ;;  %v1477_v39 = vmax.f32 %v1171_v24, 0.0  ;;  %v4997_v28 = vld [vmem:[%s5527_s2] ss:$0 sm:$0xff] }
 0x227   :  { %v4074_v36 = vpop.f32.mrf.mxu0  ;;  %4275 = vmatmul.mubr.msk.f32.gmra.mxu1 %vm1537_vm2, %v1475_v22 }
 0x228   :  { %3176 = vst [vmem:[%s5530_s5 + $0x38] sm:$0xff] %v2634_v30  ;;  %v1476_v37 = vmax.f32 %v1166_v32, 0.0  ;;  %v2633_v38 = vmax.f32 %v2019_v34, 0.0  ;;  %v1181_v40 = vadd.f32 %v4074_v36, %v4633_v52 }
 0x229   :  { %v1175_v41 = vpop.f32.mrf.mxu0 }
 0x22a   :  { %3174 = vst [vmem:[%s5530_s5 + $0x30] sm:$0xff] %v2633_v38  ;;  %v1176_v42 = vadd.f32 %v4633_v52, %v1175_v41  ;;  %4277 = vmatprep.mubr.msk.f32.mxu1 %vm1537_vm2, %v1476_v37  ;;  %v1479_v49 = vmax.f32 %v1181_v40, 0.0 }
 0x22b   :  { %v4077_v43 = vpop.f32.mrf.mxu0  ;;  %v4168_v45 = vpop.f32.mrf.mxu1  ;;  %4278 = vmatmul.mubr.msk.f32.gmra.mxu1 %vm1537_vm2, %v1477_v39 }
 0x22c   :  { %v1478_v48 = vmax.f32 %v1176_v42, 0.0  ;;  %v2034_v51 = vadd.f32 %v4168_v45, %v4900_v44  ;;  %v1191_v53 = vadd.f32 %v4077_v43, %v4633_v52 }
 0x22d   :  { %v1185_v54 = vpop.f32.mrf.mxu0  ;;  %v2028_v46 = vpop.f32.mrf.mxu1 }
 0x22e   :  { %v2636_v47 = vmax.f32 %v2034_v51, 0.0  ;;  %v1186_v55 = vadd.f32 %v4633_v52, %v1185_v54  ;;  %v2029_v50 = vadd.f32 %v4900_v44, %v2028_v46  ;;  %4280 = vmatprep.mubr.msk.f32.mxu1 %vm1537_vm2, %v1478_v48  ;;  %v1481_v58 = vmax.f32 %v1191_v53, 0.0 }
 0x22f   :  { %v4080_v56 = vpop.f32.mrf.mxu0  ;;  %4281 = vmatmul.mubr.msk.f32.gmra.mxu1 %vm1537_vm2, %v1479_v49 }
 0x230   :  { %3180 = vst [vmem:[%s5530_s5 + $0x48] sm:$0xff] %v2636_v47  ;;  %v1480_v57 = vmax.f32 %v1186_v55, 0.0  ;;  %v2635_v59 = vmax.f32 %v2029_v50, 0.0  ;;  %v1201_v60 = vadd.f32 %v4080_v56, %v4633_v52 }
 0x231   :  { %v1195_v61 = vpop.f32.mrf.mxu0 }
 0x232   :  { %3178 = vst [vmem:[%s5530_s5 + $0x40] sm:$0xff] %v2635_v59  ;;  %v1196_v62 = vadd.f32 %v4633_v52, %v1195_v61  ;;  %4283 = vmatprep.mubr.msk.f32.mxu1 %vm1537_vm2, %v1480_v57  ;;  %v1483_v3 = vmax.f32 %v1201_v60, 0.0 }
 0x233   :  { %v4083_v63 = vpop.f32.mrf.mxu0  ;;  %v4171_v0 = vpop.f32.mrf.mxu1  ;;  %4284 = vmatmul.mubr.msk.f32.gmra.mxu1 %vm1537_vm2, %v1481_v58 }
 0x234   :  { %v1482_v1 = vmax.f32 %v1196_v62, 0.0  ;;  %v2044_v2 = vadd.f32 %v4171_v0, %v4900_v44  ;;  %v1211_v4 = vadd.f32 %v4083_v63, %v4633_v52 }
 0x235   :  { %v1205_v5 = vpop.f32.mrf.mxu0  ;;  %v2038_v6 = vpop.f32.mrf.mxu1 }
 0x236   :  { %v2638_v7 = vmax.f32 %v2044_v2, 0.0  ;;  %v1206_v9 = vadd.f32 %v4633_v52, %v1205_v5  ;;  %v2039_v11 = vadd.f32 %v4900_v44, %v2038_v6  ;;  %4286 = vmatprep.mubr.msk.f32.mxu1 %vm1537_vm2, %v1482_v1  ;;  %v1485_v21 = vmax.f32 %v1211_v4, 0.0 }
 0x237   :  { %v4086_v15 = vpop.f32.mrf.mxu0  ;;  %4287 = vmatmul.mubr.msk.f32.gmra.mxu1 %vm1537_vm2, %v1483_v3 }
 0x238   :  { %3184 = vst [vmem:[%s5530_s5 + $0x58] sm:$0xff] %v2638_v7  ;;  %v1484_v17 = vmax.f32 %v1206_v9, 0.0  ;;  %v2637_v19 = vmax.f32 %v2039_v11, 0.0  ;;  %v1221_v25 = vadd.f32 %v4086_v15, %v4633_v52 }
 0x239   :  { %v1215_v27 = vpop.f32.mrf.mxu0 }
 0x23a   :  { %3182 = vst [vmem:[%s5530_s5 + $0x50] sm:$0xff] %v2637_v19  ;;  %v1216_v29 = vadd.f32 %v4633_v52, %v1215_v27  ;;  %4289 = vmatprep.mubr.msk.f32.mxu1 %vm1537_vm2, %v1484_v17  ;;  %v1487_v12 = vmax.f32 %v1221_v25, 0.0 }
 0x23b   :  { %v4089_v31 = vpop.f32.mrf.mxu0  ;;  %v4174_v33 = vpop.f32.mrf.mxu1  ;;  %4290 = vmatmul.mubr.msk.f32.gmra.mxu1 %vm1537_vm2, %v1485_v21 }
 0x23c   :  { %v1486_v35 = vmax.f32 %v1216_v29, 0.0  ;;  %v2054_v10 = vadd.f32 %v4174_v33, %v4900_v44  ;;  %v1231_v13 = vadd.f32 %v4089_v31, %v4633_v52 }
 0x23d   :  { %v1225_v23 = vpop.f32.mrf.mxu0  ;;  %v2048_v14 = vpop.f32.mrf.mxu1 }
 0x23e   :  { %v2640_v16 = vmax.f32 %v2054_v10, 0.0  ;;  %v1226_v8 = vadd.f32 %v4633_v52, %v1225_v23  ;;  %v2049_v18 = vadd.f32 %v4900_v44, %v2048_v14  ;;  %4292 = vmatprep.mubr.msk.f32.mxu1 %vm1537_vm2, %v1486_v35  ;;  %v1489_v26 = vmax.f32 %v1231_v13, 0.0 }
 0x23f   :  { %v4092_v20 = vpop.f32.mrf.mxu0  ;;  %4293 = vmatmul.mubr.msk.f32.gmra.mxu1 %vm1537_vm2, %v1487_v12 }
 0x240   :  { %3188 = vst [vmem:[%s5530_s5 + $0x68] sm:$0xff] %v2640_v16  ;;  %v1488_v22 = vmax.f32 %v1226_v8, 0.0  ;;  %v2639_v24 = vmax.f32 %v2049_v18, 0.0  ;;  %v1241_v52 = vadd.f32 %v4997_v28, %v4092_v20 }
 0x241   :  { %v1235_v30 = vpop.f32.mrf.mxu0 }
 0x242   :  { %3186 = vst [vmem:[%s5530_s5 + $0x60] sm:$0xff] %v2639_v24  ;;  %v1236_v32 = vadd.f32 %v4997_v28, %v1235_v30  ;;  %4295 = vmatprep.mubr.msk.f32.mxu1 %vm1537_vm2, %v1488_v22  ;;  %v1491_v39 = vmax.f32 %v1241_v52, 0.0 }
 0x243   :  { %v4095_v34 = vpop.f32.mrf.mxu0  ;;  %v4177_v36 = vpop.f32.mrf.mxu1  ;;  %4296 = vmatmul.mubr.msk.f32.gmra.mxu1 %vm1537_vm2, %v1489_v26 }
 0x244   :  { %v1490_v37 = vmax.f32 %v1236_v32, 0.0  ;;  %v2064_v38 = vadd.f32 %v4177_v36, %v4900_v44  ;;  %v1251_v40 = vadd.f32 %v4997_v28, %v4095_v34 }
 0x245   :  { %v1245_v41 = vpop.f32.mrf.mxu0  ;;  %v2058_v42 = vpop.f32.mrf.mxu1 }
 0x246   :  { %v2642_v43 = vmax.f32 %v2064_v38, 0.0  ;;  %v1246_v45 = vadd.f32 %v4997_v28, %v1245_v41  ;;  %v2059_v48 = vadd.f32 %v4900_v44, %v2058_v42  ;;  %4298 = vmatprep.mubr.msk.f32.mxu1 %vm1537_vm2, %v1490_v37  ;;  %v1493_v54 = vmax.f32 %v1251_v40, 0.0 }
 0x247   :  { %v4098_v51 = vpop.f32.mrf.mxu0  ;;  %4299 = vmatmul.mubr.msk.f32.gmra.mxu1 %vm1537_vm2, %v1491_v39 }
 0x248   :  { %3192 = vst [vmem:[%s5530_s5 + $0x78] sm:$0xff] %v2642_v43  ;;  %v1492_v49 = vmax.f32 %v1246_v45, 0.0  ;;  %v2641_v53 = vmax.f32 %v2059_v48, 0.0  ;;  %v1261_v46 = vadd.f32 %v4997_v28, %v4098_v51 }
 0x249   :  { %v1255_v47 = vpop.f32.mrf.mxu0 }
 0x24a   :  { %3190 = vst [vmem:[%s5530_s5 + $0x70] sm:$0xff] %v2641_v53  ;;  %v1256_v55 = vadd.f32 %v4997_v28, %v1255_v47  ;;  %4301 = vmatprep.mubr.msk.f32.mxu1 %vm1537_vm2, %v1492_v49  ;;  %v1495_v58 = vmax.f32 %v1261_v46, 0.0 }
 0x24b   :  { %v4101_v50 = vpop.f32.mrf.mxu0  ;;  %v4180_v56 = vpop.f32.mrf.mxu1  ;;  %4302 = vmatmul.mubr.msk.f32.gmra.mxu1 %vm1537_vm2, %v1493_v54 }
 0x24c   :  { %v1494_v57 = vmax.f32 %v1256_v55, 0.0  ;;  %v2074_v59 = vadd.f32 %v4180_v56, %v4900_v44  ;;  %v1271_v60 = vadd.f32 %v4997_v28, %v4101_v50 }
 0x24d   :  { %v1265_v61 = vpop.f32.mrf.mxu0  ;;  %v2068_v62 = vpop.f32.mrf.mxu1 }
 0x24e   :  { %v2644_v63 = vmax.f32 %v2074_v59, 0.0  ;;  %v1266_v0 = vadd.f32 %v4997_v28, %v1265_v61  ;;  %v2069_v1 = vadd.f32 %v4900_v44, %v2068_v62  ;;  %4304 = vmatprep.mubr.msk.f32.mxu1 %vm1537_vm2, %v1494_v57  ;;  %v1497_v5 = vmax.f32 %v1271_v60, 0.0 }
 0x24f   :  { %v4104_v2 = vpop.f32.mrf.mxu0  ;;  %4305 = vmatmul.mubr.msk.f32.gmra.mxu1 %vm1537_vm2, %v1495_v58 }
 0x250   :  { %3196 = vst [vmem:[%s5530_s5 + $0x88] sm:$0xff] %v2644_v63  ;;  %v1496_v3 = vmax.f32 %v1266_v0, 0.0  ;;  %v2643_v4 = vmax.f32 %v2069_v1, 0.0  ;;  %v1281_v6 = vadd.f32 %v4997_v28, %v4104_v2 }
 0x251   :  { %v1275_v7 = vpop.f32.mrf.mxu0 }
 0x252   :  { %3194 = vst [vmem:[%s5530_s5 + $0x80] sm:$0xff] %v2643_v4  ;;  %v1276_v9 = vadd.f32 %v4997_v28, %v1275_v7  ;;  %4307 = vmatprep.mubr.msk.f32.mxu1 %vm1537_vm2, %v1496_v3  ;;  %v1499_v21 = vmax.f32 %v1281_v6, 0.0 }
 0x253   :  { %v4107_v11 = vpop.f32.mrf.mxu0  ;;  %v4183_v15 = vpop.f32.mrf.mxu1  ;;  %4308 = vmatmul.mubr.msk.f32.gmra.mxu1 %vm1537_vm2, %v1497_v5 }
 0x254   :  { %v1498_v17 = vmax.f32 %v1276_v9, 0.0  ;;  %v2084_v19 = vadd.f32 %v4183_v15, %v4900_v44  ;;  %v1291_v25 = vadd.f32 %v4997_v28, %v4107_v11 }
 0x255   :  { %v1285_v27 = vpop.f32.mrf.mxu0  ;;  %v2078_v29 = vpop.f32.mrf.mxu1 }
 0x256   :  { %v2646_v31 = vmax.f32 %v2084_v19, 0.0  ;;  %v1286_v33 = vadd.f32 %v4997_v28, %v1285_v27  ;;  %v2079_v35 = vadd.f32 %v4900_v44, %v2078_v29  ;;  %4310 = vmatprep.mubr.msk.f32.mxu1 %vm1537_vm2, %v1498_v17  ;;  %v1501_v23 = vmax.f32 %v1291_v25, 0.0 }
 0x257   :  { %v4110_v10 = vpop.f32.mrf.mxu0  ;;  %4311 = vmatmul.mubr.msk.f32.gmra.mxu1 %vm1537_vm2, %v1499_v21 }
 0x258   :  { %3200 = vst [vmem:[%s5530_s5 + $0x98] sm:$0xff] %v2646_v31  ;;  %v1500_v12 = vmax.f32 %v1286_v33, 0.0  ;;  %v2645_v13 = vmax.f32 %v2079_v35, 0.0  ;;  %v1301_v14 = vadd.f32 %v4997_v28, %v4110_v10 }
 0x259   :  { %v1295_v16 = vpop.f32.mrf.mxu0 }
 0x25a   :  { %3198 = vst [vmem:[%s5530_s5 + $0x90] sm:$0xff] %v2645_v13  ;;  %v1296_v8 = vadd.f32 %v4997_v28, %v1295_v16  ;;  %4313 = vmatprep.mubr.msk.f32.mxu1 %vm1537_vm2, %v1500_v12  ;;  %v1503_v26 = vmax.f32 %v1301_v14, 0.0 }
 0x25b   :  { %v4113_v18 = vpop.f32.mrf.mxu0  ;;  %v4186_v20 = vpop.f32.mrf.mxu1  ;;  %4314 = vmatmul.mubr.msk.f32.gmra.mxu1 %vm1537_vm2, %v1501_v23 }
 0x25c   :  { %v1502_v22 = vmax.f32 %v1296_v8, 0.0  ;;  %v2094_v24 = vadd.f32 %v4186_v20, %v4900_v44  ;;  %v1311_v52 = vadd.f32 %v4997_v28, %v4113_v18 }
 0x25d   :  { %v1305_v30 = vpop.f32.mrf.mxu0  ;;  %v2088_v32 = vpop.f32.mrf.mxu1 }
 0x25e   :  { %v2648_v34 = vmax.f32 %v2094_v24, 0.0  ;;  %v1306_v36 = vadd.f32 %v4997_v28, %v1305_v30  ;;  %v2089_v37 = vadd.f32 %v4900_v44, %v2088_v32  ;;  %4316 = vmatprep.mubr.msk.f32.mxu1 %vm1537_vm2, %v1502_v22  ;;  %v1505_v41 = vmax.f32 %v1311_v52, 0.0 }
 0x25f   :  { %v4116_v38 = vpop.f32.mrf.mxu0  ;;  %4317 = vmatmul.mubr.msk.f32.gmra.mxu1 %vm1537_vm2, %v1503_v26 }
 0x260   :  { %3204 = vst [vmem:[%s5530_s5 + $0xa8] sm:$0xff] %v2648_v34  ;;  %v1504_v39 = vmax.f32 %v1306_v36, 0.0  ;;  %v2647_v40 = vmax.f32 %v2089_v37, 0.0  ;;  %v1321_v42 = vadd.f32 %v4997_v28, %v4116_v38 }
 0x261   :  { %v1315_v43 = vpop.f32.mrf.mxu0 }
 0x262   :  { %3202 = vst [vmem:[%s5530_s5 + $0xa0] sm:$0xff] %v2647_v40  ;;  %v1316_v45 = vadd.f32 %v4997_v28, %v1315_v43  ;;  %4319 = vmatprep.mubr.msk.f32.mxu1 %vm1537_vm2, %v1504_v39  ;;  %v1507_v54 = vmax.f32 %v1321_v42, 0.0 }
 0x263   :  { %v4119_v48 = vpop.f32.mrf.mxu0  ;;  %v4189_v51 = vpop.f32.mrf.mxu1  ;;  %4320 = vmatmul.mubr.msk.f32.gmra.mxu1 %vm1537_vm2, %v1505_v41 }
 0x264   :  { %v1506_v49 = vmax.f32 %v1316_v45, 0.0  ;;  %v2104_v53 = vadd.f32 %v4189_v51, %v4900_v44  ;;  %v1331_v46 = vadd.f32 %v4997_v28, %v4119_v48 }
 0x265   :  { %v1325_v47 = vpop.f32.mrf.mxu0  ;;  %v2098_v55 = vpop.f32.mrf.mxu1 }
 0x266   :  { %v2650_v50 = vmax.f32 %v2104_v53, 0.0  ;;  %v1326_v56 = vadd.f32 %v4997_v28, %v1325_v47  ;;  %v2099_v57 = vadd.f32 %v4900_v44, %v2098_v55  ;;  %4322 = vmatprep.mubr.msk.f32.mxu1 %vm1537_vm2, %v1506_v49  ;;  %v1509_v61 = vmax.f32 %v1331_v46, 0.0 }
 0x267   :  { %v4122_v59 = vpop.f32.mrf.mxu0  ;;  %4323 = vmatmul.mubr.msk.f32.gmra.mxu1 %vm1537_vm2, %v1507_v54 }
 0x268   :  { %3208 = vst [vmem:[%s5530_s5 + $0xb8] sm:$0xff] %v2650_v50  ;;  %v1508_v58 = vmax.f32 %v1326_v56, 0.0  ;;  %v2649_v60 = vmax.f32 %v2099_v57, 0.0  ;;  %v1341_v62 = vadd.f32 %v4997_v28, %v4122_v59 }
 0x269   :  { %v1335_v63 = vpop.f32.mrf.mxu0 }
 0x26a   :  { %3206 = vst [vmem:[%s5530_s5 + $0xb0] sm:$0xff] %v2649_v60  ;;  %v1336_v0 = vadd.f32 %v4997_v28, %v1335_v63  ;;  %4325 = vmatprep.mubr.msk.f32.mxu1 %vm1537_vm2, %v1508_v58  ;;  %v1511_v5 = vmax.f32 %v1341_v62, 0.0 }
 0x26b   :  { %v4125_v1 = vpop.f32.mrf.mxu0  ;;  %v4192_v2 = vpop.f32.mrf.mxu1  ;;  %4326 = vmatmul.mubr.msk.f32.gmra.mxu1 %vm1537_vm2, %v1509_v61 }
 0x26c   :  { %v1510_v3 = vmax.f32 %v1336_v0, 0.0  ;;  %v2114_v4 = vadd.f32 %v4192_v2, %v4900_v44  ;;  %v1351_v6 = vadd.f32 %v4997_v28, %v4125_v1 }
 0x26d   :  { %v1345_v7 = vpop.f32.mrf.mxu0  ;;  %v2108_v9 = vpop.f32.mrf.mxu1 }
 0x26e   :  { %v2652_v11 = vmax.f32 %v2114_v4, 0.0  ;;  %v1346_v15 = vadd.f32 %v4997_v28, %v1345_v7  ;;  %v2109_v17 = vadd.f32 %v4900_v44, %v2108_v9  ;;  %4328 = vmatprep.mubr.msk.f32.mxu1 %vm1537_vm2, %v1510_v3  ;;  %v1513_v27 = vmax.f32 %v1351_v6, 0.0 }
 0x26f   :  { %v4128_v19 = vpop.f32.mrf.mxu0  ;;  %4329 = vmatmul.mubr.msk.f32.gmra.mxu1 %vm1537_vm2, %v1511_v5 }
 0x270   :  { %3212 = vst [vmem:[%s5530_s5 + $0xc8] sm:$0xff] %v2652_v11  ;;  %v1512_v21 = vmax.f32 %v1346_v15, 0.0  ;;  %v2651_v25 = vmax.f32 %v2109_v17, 0.0  ;;  %v1361_v29 = vadd.f32 %v4997_v28, %v4128_v19 }
 0x271   :  { %v1355_v31 = vpop.f32.mrf.mxu0 }
 0x272   :  { %3210 = vst [vmem:[%s5530_s5 + $0xc0] sm:$0xff] %v2651_v25  ;;  %v1356_v33 = vadd.f32 %v4997_v28, %v1355_v31  ;;  %4331 = vmatprep.mubr.msk.f32.mxu1 %vm1537_vm2, %v1512_v21  ;;  %v1515_v23 = vmax.f32 %v1361_v29, 0.0 }
 0x273   :  { %v4131_v35 = vpop.f32.mrf.mxu0  ;;  %v4195_v10 = vpop.f32.mrf.mxu1  ;;  %4332 = vmatmul.mubr.msk.f32.gmra.mxu1 %vm1537_vm2, %v1513_v27 }
 0x274   :  { %v1514_v12 = vmax.f32 %v1356_v33, 0.0  ;;  %v2124_v13 = vadd.f32 %v4195_v10, %v4900_v44  ;;  %v1371_v14 = vadd.f32 %v4997_v28, %v4131_v35 }
 0x275   :  { %v1365_v16 = vpop.f32.mrf.mxu0  ;;  %v2118_v8 = vpop.f32.mrf.mxu1 }
 0x276   :  { %v2654_v18 = vmax.f32 %v2124_v13, 0.0  ;;  %v1366_v20 = vadd.f32 %v4997_v28, %v1365_v16  ;;  %v2119_v22 = vadd.f32 %v4900_v44, %v2118_v8  ;;  %4334 = vmatprep.mubr.msk.f32.mxu1 %vm1537_vm2, %v1514_v12  ;;  %v1517_v30 = vmax.f32 %v1371_v14, 0.0 }
 0x277   :  { %v4134_v24 = vpop.f32.mrf.mxu0  ;;  %4335 = vmatmul.mubr.msk.f32.gmra.mxu1 %vm1537_vm2, %v1515_v23 }
 0x278   :  { %3216 = vst [vmem:[%s5530_s5 + $0xd8] sm:$0xff] %v2654_v18  ;;  %v1516_v26 = vmax.f32 %v1366_v20, 0.0  ;;  %v2653_v52 = vmax.f32 %v2119_v22, 0.0  ;;  %v1381_v32 = vadd.f32 %v4997_v28, %v4134_v24 }
 0x279   :  { %v1375_v34 = vpop.f32.mrf.mxu0 }
 0x27a   :  { %3214 = vst [vmem:[%s5530_s5 + $0xd0] sm:$0xff] %v2653_v52  ;;  %v1376_v36 = vadd.f32 %v4997_v28, %v1375_v34  ;;  %4337 = vmatprep.mubr.msk.f32.mxu1 %vm1537_vm2, %v1516_v26  ;;  %v1519_v41 = vmax.f32 %v1381_v32, 0.0 }
 0x27b   :  { %v4137_v37 = vpop.f32.mrf.mxu0  ;;  %v4198_v38 = vpop.f32.mrf.mxu1  ;;  %4338 = vmatmul.mubr.msk.f32.gmra.mxu1 %vm1537_vm2, %v1517_v30 }
 0x27c   :  { %v1518_v39 = vmax.f32 %v1376_v36, 0.0  ;;  %v2134_v40 = vadd.f32 %v4198_v38, %v4900_v44  ;;  %v1391_v42 = vadd.f32 %v4997_v28, %v4137_v37 }
 0x27d   :  { %v1385_v43 = vpop.f32.mrf.mxu0  ;;  %v2128_v45 = vpop.f32.mrf.mxu1 }
 0x27e   :  { %v2656_v48 = vmax.f32 %v2134_v40, 0.0  ;;  %v1386_v51 = vadd.f32 %v4997_v28, %v1385_v43  ;;  %v2129_v49 = vadd.f32 %v4900_v44, %v2128_v45  ;;  %4340 = vmatprep.mubr.msk.f32.mxu1 %vm1537_vm2, %v1518_v39  ;;  %v1521_v55 = vmax.f32 %v1391_v42, 0.0 }
 0x27f   :  { %v4156_v53 = vpop.f32.mrf.mxu0  ;;  %4341 = vmatmul.mubr.msk.f32.gmra.mxu1 %vm1537_vm2, %v1519_v41 }
 0x280   :  { %3220 = vst [vmem:[%s5530_s5 + $0xe8] sm:$0xff] %v2656_v48  ;;  %v1520_v54 = vmax.f32 %v1386_v51, 0.0  ;;  %v2655_v46 = vmax.f32 %v2129_v49, 0.0  ;;  %v1994_v47 = vadd.f32 %v4156_v53, %v4900_v44 }
 0x281   :  { %v1988_v50 = vpop.f32.mrf.mxu0 }
 0x282   :  { %3218 = vst [vmem:[%s5530_s5 + $0xe0] sm:$0xff] %v2655_v46  ;;  %v2628_v28 = vmax.f32 %v1994_v47, 0.0  ;;  %v1989_v56 = vadd.f32 %v4900_v44, %v1988_v50  ;;  %4343 = vmatprep.mubr.msk.f32.mxu1 %vm1537_vm2, %v1520_v54 }
 0x283   :  { %v4201_v57 = vpop.f32.mrf.mxu1  ;;  %4344 = vmatmul.mubr.msk.f32.gmra.mxu1 %vm1537_vm2, %v1521_v55 }
 0x284   :  { %3164 = vst [vmem:[%s5530_s5 + $0x8] sm:$0xff] %v2628_v28  ;;  %v2627_v59 = vmax.f32 %v1989_v56, 0.0  ;;  %v2144_v58 = vadd.f32 %v4201_v57, %v4900_v44 }
 0x285   :  { %v2138_v60 = vpop.f32.mrf.mxu1 }
 0x286   :  { %3162 = vst [vmem:[%s5530_s5] sm:$0xff] %v2627_v59  ;;  %v2658_v61 = vmax.f32 %v2144_v58, 0.0  ;;  %v2139_v62 = vadd.f32 %v4900_v44, %v2138_v60 }
 0x287   :  { %v4204_v63 = vpop.f32.mrf.mxu1 }
 0x288   :  { %3224 = vst [vmem:[%s5530_s5 + $0xf8] sm:$0xff] %v2658_v61  ;;  %v2657_v0 = vmax.f32 %v2139_v62, 0.0  ;;  %v2154_v1 = vadd.f32 %v4204_v63, %v4900_v44 }
 0x289   :  { %v2148_v2 = vpop.f32.mrf.mxu1 }
 0x28a   :  { %3222 = vst [vmem:[%s5530_s5 + $0xf0] sm:$0xff] %v2657_v0  ;;  %v2660_v3 = vmax.f32 %v2154_v1, 0.0  ;;  %v2149_v4 = vadd.f32 %v4900_v44, %v2148_v2 }
 0x28b   :  { %v4207_v5 = vpop.f32.mrf.mxu1 }
 0x28c   :  { %3228 = vst [vmem:[%s5530_s5 + $0x108] sm:$0xff] %v2660_v3  ;;  %v2659_v6 = vmax.f32 %v2149_v4, 0.0  ;;  %v2164_v7 = vadd.f32 %v4207_v5, %v4900_v44 }
 0x28d   :  { %v2158_v9 = vpop.f32.mrf.mxu1 }
 0x28e   :  { %3226 = vst [vmem:[%s5530_s5 + $0x100] sm:$0xff] %v2659_v6  ;;  %v2662_v11 = vmax.f32 %v2164_v7, 0.0  ;;  %v2159_v15 = vadd.f32 %v4900_v44, %v2158_v9 }
 0x28f   :  { %v4210_v17 = vpop.f32.mrf.mxu1 }
 0x290   :  { %3232 = vst [vmem:[%s5530_s5 + $0x118] sm:$0xff] %v2662_v11  ;;  %v2661_v19 = vmax.f32 %v2159_v15, 0.0  ;;  %v2174_v21 = vadd.f32 %v4210_v17, %v4900_v44 }
 0x291   :  { %v2168_v25 = vpop.f32.mrf.mxu1 }
 0x292   :  { %3230 = vst [vmem:[%s5530_s5 + $0x110] sm:$0xff] %v2661_v19  ;;  %v2664_v27 = vmax.f32 %v2174_v21, 0.0  ;;  %v2169_v29 = vadd.f32 %v4900_v44, %v2168_v25 }
 0x293   :  { %v4213_v31 = vpop.f32.mrf.mxu1 }
 0x294   :  { %3236 = vst [vmem:[%s5530_s5 + $0x128] sm:$0xff] %v2664_v27  ;;  %v2663_v33 = vmax.f32 %v2169_v29, 0.0  ;;  %v2184_v35 = vadd.f32 %v4213_v31, %v4900_v44 }
 0x295   :  { %v2178_v10 = vpop.f32.mrf.mxu1 }
 0x296   :  { %3234 = vst [vmem:[%s5530_s5 + $0x120] sm:$0xff] %v2663_v33  ;;  %v2666_v12 = vmax.f32 %v2184_v35, 0.0  ;;  %v2179_v13 = vadd.f32 %v4900_v44, %v2178_v10 }
 0x297   :  { %v4216_v23 = vpop.f32.mrf.mxu1 }
 0x298   :  { %3240 = vst [vmem:[%s5530_s5 + $0x138] sm:$0xff] %v2666_v12  ;;  %v2665_v14 = vmax.f32 %v2179_v13, 0.0  ;;  %v2194_v16 = vadd.f32 %v4216_v23, %v4900_v44 }
 0x299   :  { %v2188_v8 = vpop.f32.mrf.mxu1 }
 0x29a   :  { %3238 = vst [vmem:[%s5530_s5 + $0x130] sm:$0xff] %v2665_v14  ;;  %v2668_v18 = vmax.f32 %v2194_v16, 0.0  ;;  %v2189_v20 = vadd.f32 %v4900_v44, %v2188_v8 }
 0x29b   :  { %v4219_v22 = vpop.f32.mrf.mxu1 }
 0x29c   :  { %3244 = vst [vmem:[%s5530_s5 + $0x148] sm:$0xff] %v2668_v18  ;;  %v2667_v24 = vmax.f32 %v2189_v20, 0.0  ;;  %v2204_v26 = vadd.f32 %v4219_v22, %v4900_v44 }
 0x29d   :  { %v2198_v52 = vpop.f32.mrf.mxu1 }
 0x29e   :  { %3242 = vst [vmem:[%s5530_s5 + $0x140] sm:$0xff] %v2667_v24  ;;  %v2670_v30 = vmax.f32 %v2204_v26, 0.0  ;;  %v2199_v32 = vadd.f32 %v4900_v44, %v2198_v52 }
 0x29f   :  { %v4222_v34 = vpop.f32.mrf.mxu1 }
 0x2a0   :  { %3248 = vst [vmem:[%s5530_s5 + $0x158] sm:$0xff] %v2670_v30  ;;  %v2669_v36 = vmax.f32 %v2199_v32, 0.0  ;;  %v2214_v37 = vadd.f32 %v4222_v34, %v4900_v44 }
 0x2a1   :  { %v2208_v38 = vpop.f32.mrf.mxu1 }
 0x2a2   :  { %3246 = vst [vmem:[%s5530_s5 + $0x150] sm:$0xff] %v2669_v36  ;;  %v2672_v39 = vmax.f32 %v2214_v37, 0.0  ;;  %v2209_v40 = vadd.f32 %v4900_v44, %v2208_v38 }
 0x2a3   :  { %v4225_v41 = vpop.f32.mrf.mxu1 }
 0x2a4   :  { %3252 = vst [vmem:[%s5530_s5 + $0x168] sm:$0xff] %v2672_v39  ;;  %v2671_v42 = vmax.f32 %v2209_v40, 0.0  ;;  %v2224_v43 = vadd.f32 %v4225_v41, %v4900_v44 }
 0x2a5   :  { %v2218_v45 = vpop.f32.mrf.mxu1 }
 0x2a6   :  { %3250 = vst [vmem:[%s5530_s5 + $0x160] sm:$0xff] %v2671_v42  ;;  %v2674_v48 = vmax.f32 %v2224_v43, 0.0  ;;  %v2219_v51 = vadd.f32 %v4900_v44, %v2218_v45 }
 0x2a7   :  { %v4228_v49 = vpop.f32.mrf.mxu1 }
 0x2a8   :  { %3256 = vst [vmem:[%s5530_s5 + $0x178] sm:$0xff] %v2674_v48  ;;  %v2673_v53 = vmax.f32 %v2219_v51, 0.0  ;;  %v2234_v54 = vadd.f32 %v4228_v49, %v4900_v44 }
 0x2a9   :  { %v2228_v46 = vpop.f32.mrf.mxu1 }
 0x2aa   :  { %3254 = vst [vmem:[%s5530_s5 + $0x170] sm:$0xff] %v2673_v53  ;;  %v2676_v47 = vmax.f32 %v2234_v54, 0.0  ;;  %v2229_v55 = vadd.f32 %v4900_v44, %v2228_v46 }
 0x2ab   :  { %v4231_v50 = vpop.f32.mrf.mxu1 }
 0x2ac   :  { %3260 = vst [vmem:[%s5530_s5 + $0x188] sm:$0xff] %v2676_v47  ;;  %v2675_v28 = vmax.f32 %v2229_v55, 0.0  ;;  %v2244_v56 = vadd.f32 %v4231_v50, %v4900_v44 }
 0x2ad   :  { %v2238_v57 = vpop.f32.mrf.mxu1 }
 0x2ae   :  { %3258 = vst [vmem:[%s5530_s5 + $0x180] sm:$0xff] %v2675_v28  ;;  %v2678_v59 = vmax.f32 %v2244_v56, 0.0  ;;  %v2239_v58 = vadd.f32 %v4900_v44, %v2238_v57 }
 0x2af   :  { %v4234_v60 = vpop.f32.mrf.mxu1 }
 0x2b0   :  { %3264 = vst [vmem:[%s5530_s5 + $0x198] sm:$0xff] %v2678_v59  ;;  %v2677_v61 = vmax.f32 %v2239_v58, 0.0  ;;  %v2254_v62 = vadd.f32 %v4234_v60, %v4900_v44  ;;  %v5308_v58 = vld [vmem:[%s5529_s4] ss:$0 sm:$0xff] }
 0x2b1   :  { %v2248_v63 = vpop.f32.mrf.mxu1 }
 0x2b2   :  { %3262 = vst [vmem:[%s5530_s5 + $0x190] sm:$0xff] %v2677_v61  ;;  %v2680_v0 = vmax.f32 %v2254_v62, 0.0  ;;  %v2249_v1 = vadd.f32 %v4900_v44, %v2248_v63 }
 0x2b3   :  { %v4237_v2 = vpop.f32.mrf.mxu1 }
 0x2b4   :  { %3268 = vst [vmem:[%s5530_s5 + $0x1a8] sm:$0xff] %v2680_v0  ;;  %v2679_v3 = vmax.f32 %v2249_v1, 0.0  ;;  %v2264_v4 = vadd.f32 %v4237_v2, %v4900_v44 }
 0x2b5   :  { %v2258_v5 = vpop.f32.mrf.mxu1 }
 0x2b6   :  { %3266 = vst [vmem:[%s5530_s5 + $0x1a0] sm:$0xff] %v2679_v3  ;;  %v2682_v6 = vmax.f32 %v2264_v4, 0.0  ;;  %v2259_v7 = vadd.f32 %v4900_v44, %v2258_v5 }
 0x2b7   :  { %v4240_v9 = vpop.f32.mrf.mxu1 }
 0x2b8   :  { %3272 = vst [vmem:[%s5530_s5 + $0x1b8] sm:$0xff] %v2682_v6  ;;  %v2681_v11 = vmax.f32 %v2259_v7, 0.0  ;;  %v2274_v15 = vadd.f32 %v4240_v9, %v4900_v44 }
 0x2b9   :  { %v2268_v17 = vpop.f32.mrf.mxu1 }
 0x2ba   :  { %3270 = vst [vmem:[%s5530_s5 + $0x1b0] sm:$0xff] %v2681_v11  ;;  %v2684_v19 = vmax.f32 %v2274_v15, 0.0  ;;  %v2269_v21 = vadd.f32 %v4900_v44, %v2268_v17 }
 0x2bb   :  { %v4243_v25 = vpop.f32.mrf.mxu1 }
 0x2bc   :  { %3276 = vst [vmem:[%s5530_s5 + $0x1c8] sm:$0xff] %v2684_v19  ;;  %v2683_v27 = vmax.f32 %v2269_v21, 0.0  ;;  %v2284_v29 = vadd.f32 %v4243_v25, %v4900_v44 }
 0x2bd   :  { %v2278_v31 = vpop.f32.mrf.mxu1 }
 0x2be   :  { %3274 = vst [vmem:[%s5530_s5 + $0x1c0] sm:$0xff] %v2683_v27  ;;  %v2686_v33 = vmax.f32 %v2284_v29, 0.0  ;;  %v2279_v35 = vadd.f32 %v4900_v44, %v2278_v31 }
 0x2bf   :  { %v4246_v10 = vpop.f32.mrf.mxu1 }
 0x2c0   :  { %3280 = vst [vmem:[%s5530_s5 + $0x1d8] sm:$0xff] %v2686_v33  ;;  %v2685_v12 = vmax.f32 %v2279_v35, 0.0  ;;  %v2294_v13 = vadd.f32 %v4246_v10, %v4900_v44 }
 0x2c1   :  { %v2288_v23 = vpop.f32.mrf.mxu1 }
 0x2c2   :  { %3278 = vst [vmem:[%s5530_s5 + $0x1d0] sm:$0xff] %v2685_v12  ;;  %v2688_v14 = vmax.f32 %v2294_v13, 0.0  ;;  %v2289_v16 = vadd.f32 %v4900_v44, %v2288_v23 }
 0x2c3   :  { %v4249_v8 = vpop.f32.mrf.mxu1 }
 0x2c4   :  { %3284 = vst [vmem:[%s5530_s5 + $0x1e8] sm:$0xff] %v2688_v14  ;;  %v2687_v18 = vmax.f32 %v2289_v16, 0.0  ;;  %v2304_v20 = vadd.f32 %v4249_v8, %v4900_v44 }
 0x2c5   :  { %v2298_v22 = vpop.f32.mrf.mxu1 }
 0x2c6   :  { %3282 = vst [vmem:[%s5530_s5 + $0x1e0] sm:$0xff] %v2687_v18  ;;  %v2690_v24 = vmax.f32 %v2304_v20, 0.0  ;;  %v2299_v26 = vadd.f32 %v4900_v44, %v2298_v22 }
 0x2c7   :  { %v4252_v52 = vpop.f32.mrf.mxu1 }
 0x2c8   :  { %3288 = vst [vmem:[%s5530_s5 + $0x1f8] sm:$0xff] %v2690_v24  ;;  %v2689_v30 = vmax.f32 %v2299_v26, 0.0  ;;  %v2314_v32 = vadd.f32 %v4252_v52, %v4900_v44 }
 0x2c9   :  { %v2308_v34 = vpop.f32.mrf.mxu1 }
 0x2ca   :  { %3286 = vst [vmem:[%s5530_s5 + $0x1f0] sm:$0xff] %v2689_v30  ;;  %v2692_v36 = vmax.f32 %v2314_v32, 0.0  ;;  %v2309_v37 = vadd.f32 %v4900_v44, %v2308_v34 }
 0x2cb   :  { %v4255_v38 = vpop.f32.mrf.mxu1 }
 0x2cc   :  { %3292 = vst [vmem:[%s5530_s5 + $0x208] sm:$0xff] %v2692_v36  ;;  %v2691_v39 = vmax.f32 %v2309_v37, 0.0  ;;  %v2324_v40 = vadd.f32 %v4255_v38, %v4900_v44 }
 0x2cd   :  { %v2318_v41 = vpop.f32.mrf.mxu1 }
 0x2ce   :  { %3290 = vst [vmem:[%s5530_s5 + $0x200] sm:$0xff] %v2691_v39  ;;  %v2694_v42 = vmax.f32 %v2324_v40, 0.0  ;;  %v2319_v43 = vadd.f32 %v4900_v44, %v2318_v41 }
 0x2cf   :  { %v4258_v45 = vpop.f32.mrf.mxu1 }
 0x2d0   :  { %3296 = vst [vmem:[%s5530_s5 + $0x218] sm:$0xff] %v2694_v42  ;;  %v2693_v48 = vmax.f32 %v2319_v43, 0.0  ;;  %v2334_v51 = vadd.f32 %v4258_v45, %v4900_v44 }
 0x2d1   :  { %v2328_v49 = vpop.f32.mrf.mxu1 }
 0x2d2   :  { %3294 = vst [vmem:[%s5530_s5 + $0x210] sm:$0xff] %v2693_v48  ;;  %v2696_v53 = vmax.f32 %v2334_v51, 0.0  ;;  %v2329_v54 = vadd.f32 %v4900_v44, %v2328_v49 }
 0x2d3   :  { %v4261_v46 = vpop.f32.mrf.mxu1 }
 0x2d4   :  { %3300 = vst [vmem:[%s5530_s5 + $0x228] sm:$0xff] %v2696_v53  ;;  %v2695_v47 = vmax.f32 %v2329_v54, 0.0  ;;  %v2344_v55 = vadd.f32 %v4261_v46, %v4900_v44 }
 0x2d5   :  { %v2338_v50 = vpop.f32.mrf.mxu1 }
 0x2d6   :  { %3298 = vst [vmem:[%s5530_s5 + $0x220] sm:$0xff] %v2695_v47  ;;  %v2698_v28 = vmax.f32 %v2344_v55, 0.0  ;;  %v2339_v56 = vadd.f32 %v4900_v44, %v2338_v50 }
 0x2d7   :  { %v4264_v57 = vpop.f32.mrf.mxu1 }
 0x2d8   :  { %3304 = vst [vmem:[%s5530_s5 + $0x238] sm:$0xff] %v2698_v28  ;;  %v2697_v59 = vmax.f32 %v2339_v56, 0.0  ;;  %v2354_v60 = vadd.f32 %v5308_v58, %v4264_v57 }
 0x2d9   :  { %v2348_v61 = vpop.f32.mrf.mxu1 }
 0x2da   :  { %3302 = vst [vmem:[%s5530_s5 + $0x230] sm:$0xff] %v2697_v59  ;;  %v2700_v62 = vmax.f32 %v2354_v60, 0.0  ;;  %v2349_v44 = vadd.f32 %v5308_v58, %v2348_v61 }
 0x2db   :  { %v4267_v63 = vpop.f32.mrf.mxu1 }
 0x2dc   :  { %3308 = vst [vmem:[%s5530_s5 + $0x248] sm:$0xff] %v2700_v62  ;;  %v2699_v0 = vmax.f32 %v2349_v44, 0.0  ;;  %v2364_v1 = vadd.f32 %v5308_v58, %v4267_v63 }
 0x2dd   :  { %v2358_v2 = vpop.f32.mrf.mxu1 }
 0x2de   :  { %3306 = vst [vmem:[%s5530_s5 + $0x240] sm:$0xff] %v2699_v0  ;;  %v2702_v3 = vmax.f32 %v2364_v1, 0.0  ;;  %v2359_v4 = vadd.f32 %v5308_v58, %v2358_v2 }
 0x2df   :  { %v4270_v5 = vpop.f32.mrf.mxu1 }
 0x2e0   :  { %3312 = vst [vmem:[%s5530_s5 + $0x258] sm:$0xff] %v2702_v3  ;;  %v2701_v6 = vmax.f32 %v2359_v4, 0.0  ;;  %v2374_v7 = vadd.f32 %v5308_v58, %v4270_v5 }
 0x2e1   :  { %v2368_v9 = vpop.f32.mrf.mxu1 }
 0x2e2   :  { %3310 = vst [vmem:[%s5530_s5 + $0x250] sm:$0xff] %v2701_v6  ;;  %v2704_v11 = vmax.f32 %v2374_v7, 0.0  ;;  %v2369_v15 = vadd.f32 %v5308_v58, %v2368_v9 }
 0x2e3   :  { %v4273_v17 = vpop.f32.mrf.mxu1 }
 0x2e4   :  { %3316 = vst [vmem:[%s5530_s5 + $0x268] sm:$0xff] %v2704_v11  ;;  %v2703_v19 = vmax.f32 %v2369_v15, 0.0  ;;  %v2384_v21 = vadd.f32 %v5308_v58, %v4273_v17 }
 0x2e5   :  { %v2378_v25 = vpop.f32.mrf.mxu1 }
 0x2e6   :  { %3314 = vst [vmem:[%s5530_s5 + $0x260] sm:$0xff] %v2703_v19  ;;  %v2706_v27 = vmax.f32 %v2384_v21, 0.0  ;;  %v2379_v29 = vadd.f32 %v5308_v58, %v2378_v25 }
 0x2e7   :  { %v4276_v31 = vpop.f32.mrf.mxu1 }
 0x2e8   :  { %3320 = vst [vmem:[%s5530_s5 + $0x278] sm:$0xff] %v2706_v27  ;;  %v2705_v33 = vmax.f32 %v2379_v29, 0.0  ;;  %v2394_v35 = vadd.f32 %v5308_v58, %v4276_v31 }
 0x2e9   :  { %v2388_v10 = vpop.f32.mrf.mxu1 }
 0x2ea   :  { %3318 = vst [vmem:[%s5530_s5 + $0x270] sm:$0xff] %v2705_v33  ;;  %v2708_v12 = vmax.f32 %v2394_v35, 0.0  ;;  %v2389_v13 = vadd.f32 %v5308_v58, %v2388_v10 }
 0x2eb   :  { %v4279_v23 = vpop.f32.mrf.mxu1 }
 0x2ec   :  { %3324 = vst [vmem:[%s5530_s5 + $0x288] sm:$0xff] %v2708_v12  ;;  %v2707_v14 = vmax.f32 %v2389_v13, 0.0  ;;  %v2404_v16 = vadd.f32 %v5308_v58, %v4279_v23 }
 0x2ed   :  { %v2398_v8 = vpop.f32.mrf.mxu1 }
 0x2ee   :  { %3322 = vst [vmem:[%s5530_s5 + $0x280] sm:$0xff] %v2707_v14  ;;  %v2710_v18 = vmax.f32 %v2404_v16, 0.0  ;;  %v2399_v20 = vadd.f32 %v5308_v58, %v2398_v8 }
 0x2ef   :  { %v4282_v22 = vpop.f32.mrf.mxu1 }
 0x2f0   :  { %3328 = vst [vmem:[%s5530_s5 + $0x298] sm:$0xff] %v2710_v18  ;;  %v2709_v24 = vmax.f32 %v2399_v20, 0.0  ;;  %v2414_v26 = vadd.f32 %v5308_v58, %v4282_v22 }
 0x2f1   :  { %v2408_v52 = vpop.f32.mrf.mxu1 }
 0x2f2   :  { %3326 = vst [vmem:[%s5530_s5 + $0x290] sm:$0xff] %v2709_v24  ;;  %v2712_v30 = vmax.f32 %v2414_v26, 0.0  ;;  %v2409_v32 = vadd.f32 %v5308_v58, %v2408_v52 }
 0x2f3   :  { %v4285_v34 = vpop.f32.mrf.mxu1 }
 0x2f4   :  { %3332 = vst [vmem:[%s5530_s5 + $0x2a8] sm:$0xff] %v2712_v30  ;;  %v2711_v36 = vmax.f32 %v2409_v32, 0.0  ;;  %v2424_v37 = vadd.f32 %v5308_v58, %v4285_v34 }
 0x2f5   :  { %v2418_v38 = vpop.f32.mrf.mxu1 }
 0x2f6   :  { %3330 = vst [vmem:[%s5530_s5 + $0x2a0] sm:$0xff] %v2711_v36  ;;  %v2714_v39 = vmax.f32 %v2424_v37, 0.0  ;;  %v2419_v40 = vadd.f32 %v5308_v58, %v2418_v38 }
 0x2f7   :  { %v4288_v41 = vpop.f32.mrf.mxu1 }
 0x2f8   :  { %3336 = vst [vmem:[%s5530_s5 + $0x2b8] sm:$0xff] %v2714_v39  ;;  %v2713_v42 = vmax.f32 %v2419_v40, 0.0  ;;  %v2434_v43 = vadd.f32 %v5308_v58, %v4288_v41 }
 0x2f9   :  { %v2428_v45 = vpop.f32.mrf.mxu1 }
 0x2fa   :  { %3334 = vst [vmem:[%s5530_s5 + $0x2b0] sm:$0xff] %v2713_v42  ;;  %v2716_v48 = vmax.f32 %v2434_v43, 0.0  ;;  %v2429_v51 = vadd.f32 %v5308_v58, %v2428_v45 }
 0x2fb   :  { %v4291_v49 = vpop.f32.mrf.mxu1 }
 0x2fc   :  { %3340 = vst [vmem:[%s5530_s5 + $0x2c8] sm:$0xff] %v2716_v48  ;;  %v2715_v53 = vmax.f32 %v2429_v51, 0.0  ;;  %v2444_v54 = vadd.f32 %v5308_v58, %v4291_v49 }
 0x2fd   :  { %v2438_v46 = vpop.f32.mrf.mxu1 }
 0x2fe   :  { %3338 = vst [vmem:[%s5530_s5 + $0x2c0] sm:$0xff] %v2715_v53  ;;  %v2718_v47 = vmax.f32 %v2444_v54, 0.0  ;;  %v2439_v55 = vadd.f32 %v5308_v58, %v2438_v46 }
 0x2ff   :  { %v4294_v50 = vpop.f32.mrf.mxu1 }
 0x300   :  { %3344 = vst [vmem:[%s5530_s5 + $0x2d8] sm:$0xff] %v2718_v47  ;;  %v2717_v28 = vmax.f32 %v2439_v55, 0.0  ;;  %v2454_v56 = vadd.f32 %v5308_v58, %v4294_v50 }
 0x301   :  { %v2448_v57 = vpop.f32.mrf.mxu1 }
 0x302   :  { %3342 = vst [vmem:[%s5530_s5 + $0x2d0] sm:$0xff] %v2717_v28  ;;  %v2720_v59 = vmax.f32 %v2454_v56, 0.0  ;;  %v2449_v60 = vadd.f32 %v5308_v58, %v2448_v57 }
 0x303   :  { %v4297_v61 = vpop.f32.mrf.mxu1 }
 0x304   :  { %3348 = vst [vmem:[%s5530_s5 + $0x2e8] sm:$0xff] %v2720_v59  ;;  %v2719_v62 = vmax.f32 %v2449_v60, 0.0  ;;  %v2464_v44 = vadd.f32 %v5308_v58, %v4297_v61 }
 0x305   :  { %v2458_v63 = vpop.f32.mrf.mxu1 }
 0x306   :  { %3346 = vst [vmem:[%s5530_s5 + $0x2e0] sm:$0xff] %v2719_v62  ;;  %v2722_v0 = vmax.f32 %v2464_v44, 0.0  ;;  %v2459_v1 = vadd.f32 %v5308_v58, %v2458_v63 }
 0x307   :  { %v4300_v2 = vpop.f32.mrf.mxu1 }
 0x308   :  { %3352 = vst [vmem:[%s5530_s5 + $0x2f8] sm:$0xff] %v2722_v0  ;;  %v2721_v3 = vmax.f32 %v2459_v1, 0.0  ;;  %v2474_v4 = vadd.f32 %v5308_v58, %v4300_v2 }
 0x309   :  { %v2468_v5 = vpop.f32.mrf.mxu1 }
 0x30a   :  { %3350 = vst [vmem:[%s5530_s5 + $0x2f0] sm:$0xff] %v2721_v3  ;;  %v2724_v6 = vmax.f32 %v2474_v4, 0.0  ;;  %v2469_v7 = vadd.f32 %v5308_v58, %v2468_v5 }
 0x30b   :  { %v4303_v9 = vpop.f32.mrf.mxu1 }
 0x30c   :  { %3356 = vst [vmem:[%s5530_s5 + $0x308] sm:$0xff] %v2724_v6  ;;  %v2723_v11 = vmax.f32 %v2469_v7, 0.0  ;;  %v2484_v15 = vadd.f32 %v5308_v58, %v4303_v9 }
 0x30d   :  { %v2478_v17 = vpop.f32.mrf.mxu1 }
 0x30e   :  { %3354 = vst [vmem:[%s5530_s5 + $0x300] sm:$0xff] %v2723_v11  ;;  %v2726_v19 = vmax.f32 %v2484_v15, 0.0  ;;  %v2479_v21 = vadd.f32 %v5308_v58, %v2478_v17 }
 0x30f   :  { %v4306_v25 = vpop.f32.mrf.mxu1 }
 0x310   :  { %3360 = vst [vmem:[%s5530_s5 + $0x318] sm:$0xff] %v2726_v19  ;;  %v2725_v27 = vmax.f32 %v2479_v21, 0.0  ;;  %v2494_v29 = vadd.f32 %v5308_v58, %v4306_v25 }
 0x311   :  { %v2488_v31 = vpop.f32.mrf.mxu1 }
 0x312   :  { %3358 = vst [vmem:[%s5530_s5 + $0x310] sm:$0xff] %v2725_v27  ;;  %v2728_v33 = vmax.f32 %v2494_v29, 0.0  ;;  %v2489_v35 = vadd.f32 %v5308_v58, %v2488_v31 }
 0x313   :  { %v4309_v10 = vpop.f32.mrf.mxu1 }
 0x314   :  { %3364 = vst [vmem:[%s5530_s5 + $0x328] sm:$0xff] %v2728_v33  ;;  %v2727_v12 = vmax.f32 %v2489_v35, 0.0  ;;  %v2504_v13 = vadd.f32 %v5308_v58, %v4309_v10 }
 0x315   :  { %v2498_v23 = vpop.f32.mrf.mxu1 }
 0x316   :  { %3362 = vst [vmem:[%s5530_s5 + $0x320] sm:$0xff] %v2727_v12  ;;  %v2730_v14 = vmax.f32 %v2504_v13, 0.0  ;;  %v2499_v16 = vadd.f32 %v5308_v58, %v2498_v23 }
 0x317   :  { %v4312_v8 = vpop.f32.mrf.mxu1 }
 0x318   :  { %3368 = vst [vmem:[%s5530_s5 + $0x338] sm:$0xff] %v2730_v14  ;;  %v2729_v18 = vmax.f32 %v2499_v16, 0.0  ;;  %v2514_v20 = vadd.f32 %v5308_v58, %v4312_v8 }
 0x319   :  { %v2508_v22 = vpop.f32.mrf.mxu1 }
 0x31a   :  { %3366 = vst [vmem:[%s5530_s5 + $0x330] sm:$0xff] %v2729_v18  ;;  %v2732_v24 = vmax.f32 %v2514_v20, 0.0  ;;  %v2509_v26 = vadd.f32 %v5308_v58, %v2508_v22 }
 0x31b   :  { %v4315_v52 = vpop.f32.mrf.mxu1 }
 0x31c   :  { %3372 = vst [vmem:[%s5530_s5 + $0x348] sm:$0xff] %v2732_v24  ;;  %v2731_v30 = vmax.f32 %v2509_v26, 0.0  ;;  %v2524_v32 = vadd.f32 %v5308_v58, %v4315_v52 }
 0x31d   :  { %v2518_v34 = vpop.f32.mrf.mxu1 }
 0x31e   :  { %3370 = vst [vmem:[%s5530_s5 + $0x340] sm:$0xff] %v2731_v30  ;;  %v2734_v36 = vmax.f32 %v2524_v32, 0.0  ;;  %v2519_v37 = vadd.f32 %v5308_v58, %v2518_v34 }
 0x31f   :  { %v4318_v38 = vpop.f32.mrf.mxu1 }
 0x320   :  { %3376 = vst [vmem:[%s5530_s5 + $0x358] sm:$0xff] %v2734_v36  ;;  %v2733_v39 = vmax.f32 %v2519_v37, 0.0  ;;  %v2534_v40 = vadd.f32 %v5308_v58, %v4318_v38 }
 0x321   :  { %v2528_v41 = vpop.f32.mrf.mxu1 }
 0x322   :  { %3374 = vst [vmem:[%s5530_s5 + $0x350] sm:$0xff] %v2733_v39  ;;  %v2736_v42 = vmax.f32 %v2534_v40, 0.0  ;;  %v2529_v43 = vadd.f32 %v5308_v58, %v2528_v41 }
 0x323   :  { %v4321_v45 = vpop.f32.mrf.mxu1 }
 0x324   :  { %3380 = vst [vmem:[%s5530_s5 + $0x368] sm:$0xff] %v2736_v42  ;;  %v2735_v48 = vmax.f32 %v2529_v43, 0.0  ;;  %v2544_v51 = vadd.f32 %v5308_v58, %v4321_v45 }
 0x325   :  { %v2538_v49 = vpop.f32.mrf.mxu1 }
 0x326   :  { %3378 = vst [vmem:[%s5530_s5 + $0x360] sm:$0xff] %v2735_v48  ;;  %v2738_v53 = vmax.f32 %v2544_v51, 0.0  ;;  %v2539_v54 = vadd.f32 %v5308_v58, %v2538_v49 }
 0x327   :  { %v4324_v46 = vpop.f32.mrf.mxu1 }
 0x328   :  { %3384 = vst [vmem:[%s5530_s5 + $0x378] sm:$0xff] %v2738_v53  ;;  %v2737_v47 = vmax.f32 %v2539_v54, 0.0  ;;  %v2554_v55 = vadd.f32 %v5308_v58, %v4324_v46 }
 0x329   :  { %v2548_v50 = vpop.f32.mrf.mxu1 }
 0x32a   :  { %3382 = vst [vmem:[%s5530_s5 + $0x370] sm:$0xff] %v2737_v47  ;;  %v2740_v28 = vmax.f32 %v2554_v55, 0.0  ;;  %v2549_v56 = vadd.f32 %v5308_v58, %v2548_v50 }
 0x32b   :  { %v4327_v57 = vpop.f32.mrf.mxu1 }
 0x32c   :  { %3388 = vst [vmem:[%s5530_s5 + $0x388] sm:$0xff] %v2740_v28  ;;  %v2739_v59 = vmax.f32 %v2549_v56, 0.0  ;;  %v2564_v60 = vadd.f32 %v5308_v58, %v4327_v57 }
 0x32d   :  { %v2558_v61 = vpop.f32.mrf.mxu1 }
 0x32e   :  { %3386 = vst [vmem:[%s5530_s5 + $0x380] sm:$0xff] %v2739_v59  ;;  %v2742_v62 = vmax.f32 %v2564_v60, 0.0  ;;  %v2559_v44 = vadd.f32 %v5308_v58, %v2558_v61 }
 0x32f   :  { %v4330_v63 = vpop.f32.mrf.mxu1 }
 0x330   :  { %3392 = vst [vmem:[%s5530_s5 + $0x398] sm:$0xff] %v2742_v62  ;;  %v2741_v0 = vmax.f32 %v2559_v44, 0.0  ;;  %v2574_v1 = vadd.f32 %v5308_v58, %v4330_v63 }
 0x331   :  { %v2568_v2 = vpop.f32.mrf.mxu1 }
 0x332   :  { %3390 = vst [vmem:[%s5530_s5 + $0x390] sm:$0xff] %v2741_v0  ;;  %v2744_v3 = vmax.f32 %v2574_v1, 0.0  ;;  %v2569_v4 = vadd.f32 %v5308_v58, %v2568_v2 }
 0x333   :  { %v4333_v5 = vpop.f32.mrf.mxu1 }
 0x334   :  { %3396 = vst [vmem:[%s5530_s5 + $0x3a8] sm:$0xff] %v2744_v3  ;;  %v2743_v6 = vmax.f32 %v2569_v4, 0.0  ;;  %v2584_v7 = vadd.f32 %v5308_v58, %v4333_v5 }
 0x335   :  { %v2578_v9 = vpop.f32.mrf.mxu1 }
 0x336   :  { %3394 = vst [vmem:[%s5530_s5 + $0x3a0] sm:$0xff] %v2743_v6  ;;  %v2746_v11 = vmax.f32 %v2584_v7, 0.0  ;;  %v2579_v15 = vadd.f32 %v5308_v58, %v2578_v9 }
 0x337   :  { %v4336_v17 = vpop.f32.mrf.mxu1 }
 0x338   :  { %3400 = vst [vmem:[%s5530_s5 + $0x3b8] sm:$0xff] %v2746_v11  ;;  %v2745_v19 = vmax.f32 %v2579_v15, 0.0  ;;  %v2594_v21 = vadd.f32 %v5308_v58, %v4336_v17 }
 0x339   :  { %v2588_v25 = vpop.f32.mrf.mxu1 }
 0x33a   :  { %3398 = vst [vmem:[%s5530_s5 + $0x3b0] sm:$0xff] %v2745_v19  ;;  %v2748_v27 = vmax.f32 %v2594_v21, 0.0  ;;  %v2589_v29 = vadd.f32 %v5308_v58, %v2588_v25 }
 0x33b   :  { %v4339_v31 = vpop.f32.mrf.mxu1 }
 0x33c   :  { %3404 = vst [vmem:[%s5530_s5 + $0x3c8] sm:$0xff] %v2748_v27  ;;  %v2747_v33 = vmax.f32 %v2589_v29, 0.0  ;;  %v2604_v35 = vadd.f32 %v5308_v58, %v4339_v31 }
 0x33d   :  { %v2598_v10 = vpop.f32.mrf.mxu1 }
 0x33e   :  { %3402 = vst [vmem:[%s5530_s5 + $0x3c0] sm:$0xff] %v2747_v33  ;;  %v2750_v12 = vmax.f32 %v2604_v35, 0.0  ;;  %v2599_v13 = vadd.f32 %v5308_v58, %v2598_v10 }
 0x33f   :  { %v4342_v23 = vpop.f32.mrf.mxu1 }
 0x340   :  { %3408 = vst [vmem:[%s5530_s5 + $0x3d8] sm:$0xff] %v2750_v12  ;;  %v2749_v14 = vmax.f32 %v2599_v13, 0.0 }
 0x341   :  { %v2608_v16 = vpop.f32.mrf.mxu1 }
 0x342   :  { %3406 = vst [vmem:[%s5530_s5 + $0x3d0] sm:$0xff] %v2749_v14  ;;  %v2609_v8 = vadd.f32 %v5308_v58, %v2608_v16 }
 0x343   :  { %v4345_v18 = vpop.f32.mrf.mxu1 }
 0x344   :  { %v2751_v20 = vmax.f32 %v2609_v8, 0.0 }
 0x345   :  { %v2618_v22 = vpop.f32.mrf.mxu1 }
 0x346   :  { %3410 = vst [vmem:[%s5530_s5 + $0x3e0] sm:$0xff] %v2751_v20 }

</bundles_post_ra>
